<compile_context>
chip_gen: v7x
topology: tpu7x:2x2x1
jax: 0.10.0
libtpu: 0.0.40
codegen_flags: <defaults>
</compile_context>

<pallas_src>
import functools

import jax
import jax.numpy as jnp
from jax.experimental import pallas as pl
from jax.experimental.pallas import tpu as pltpu

EPS = 1e-5      # nn.InstanceNorm2d default eps
LANE = 128


def _conv_block_kernel(x_ref, w_ref, o_ref, stats_ref, *,
                       K, TH, W, CB, CBp, c_in, inv_hw, fuse_taps):
    # x_ref:     (1, Hp, Wp, C_in)  bf16  whole reflect-padded sample, resident across t
    # w_ref:     (1, K*K*C_in, CBp) bf16  weights for this output-channel block
    # o_ref:     (1, H,  W,  CB)    f32   output block, resident across t (written once)
    # stats_ref: (2, CBp)           f32   scratch: per-channel [sum, sumsq]
    t = pl.program_id(2)
    n_th = pl.num_programs(2)

    @pl.when(t == 0)
    def _():
        stats_ref[...] = jnp.zeros_like(stats_ref)

    r0 = pl.multiple_of(t * TH, TH)     # first output row of this tile (in padded coords)

    if fuse_taps:
        # One MXU matmul with contraction K*K*C_in (avoids K^2 tiny-contraction matmuls
        # and K^2-1 full-tile f32 accumulator adds when C_in is small).
        taps = []
        for kh in range(K):
            for kw in range(K):
                taps.append(x_ref[0, pl.ds(r0 + kh, TH), pl.ds(kw, W), :])   # (TH, W, C_in)
        lhs = jnp.concatenate(taps, axis=-1).reshape(TH * W, K * K * c_in)   # bf16
        acc = jnp.dot(lhs, w_ref[0], preferred_element_type=jnp.float32)     # (TH*W, CBp)
    else:
        acc = jnp.zeros((TH * W, CBp), dtype=jnp.float32)
        for kh in range(K):
            for kw in range(K):
                idx = kh * K + kw
                tap = x_ref[0, pl.ds(r0 + kh, TH), pl.ds(kw, W), :].reshape(TH * W, c_in)
                acc = acc + jnp.dot(tap, w_ref[0, idx * c_in:(idx + 1) * c_in, :],
                                    preferred_element_type=jnp.float32)

    # Per-channel partial sums via XLU sublane reductions (not MXU), accumulated over tiles.
    stats_ref[0:1, :] = stats_ref[0:1, :] + jnp.sum(acc, axis=0, keepdims=True)
    stats_ref[1:2, :] = stats_ref[1:2, :] + jnp.sum(acc * acc, axis=0, keepdims=True)

    # Stash pre-norm conv output rows in the resident output block (stays in VMEM).
    o_ref[0, pl.ds(r0, TH), :, :] = acc[:, :CB].reshape(TH, W, CB)

    # Last row tile: normalize + ReLU the whole resident sample block in place.
    @pl.when(t == n_th - 1)
    def _():
        mean = stats_ref[0:1, :CB] * inv_hw                                  # (1, CB)
        var = jnp.maximum(stats_ref[1:2, :CB] * inv_hw - mean * mean, 0.0)   # biased var
        inv_std = jax.lax.rsqrt(var + EPS)
        y = o_ref[0]                                                         # (H, W, CB)
        o_ref[0] = jnp.maximum((y - mean) * inv_std, 0.0)


def conv_block_forward_nhwc(x_nhwc, weight, bias=None, *, kernel_size=3, padding=1,
                            row_tile=None):
    """NHWC ConvBlock forward: Conv2d(stride=1, reflect pad) -> InstanceNorm2d -> ReLU.

    x_nhwc: (N, H, W, C_in) f32; weight: (C_out, C_in, K, K).  Bias is ignored because the
    InstanceNorm2d(affine=False) mean subtraction cancels a per-channel constant exactly.
    Returns (N, H, W, C_out) f32.
    """
    del bias  # cancelled by InstanceNorm2d(affine=False); no load, no add
    N, H, W, C_in = x_nhwc.shape
    C_out = weight.shape[0]
    K = kernel_size
    assert 2 * padding == K - 1, "only stride=1 'same' conv supported"

    # Output-channel blocking: lane-dense blocks when C_out allows it (also a non-batch
    # 'parallel' axis for v7x megacore); otherwise one block with unpadded HBM channels.
    if C_out % 256 == 0:
        CB = 256
    elif C_out % 128 == 0:
        CB = 128
    else:
        CB = C_out
    n_cb = C_out // CB
    CBp = CB if CB >= LANE else LANE          # matmul RHS / accumulator lanes (VMEM only)
    KKC = K * K * C_in

    # Row tile (must divide H): keep the per-tile f32 accumulator at a few MiB.
    if row_tile is None:
        row_tile = H
        while row_tile % 2 == 0 and row_tile * W * CBp * 4 > (2 << 20):
            row_tile //= 2
    assert H % row_tile == 0, "row_tile must divide H"
    TH = row_tile
    n_th = H // TH
    Hp, Wp = H + 2 * padding, W + 2 * padding

    # Reflect pad once (matches PyTorch padding_mode='reflect'); bf16 MXU operands.
    xp = jnp.pad(x_nhwc, ((0, 0), (padding, padding), (padding, padding), (0, 0)),
                 mode="reflect").astype(jnp.bfloat16)

    # (C_out, C_in, K, K) -> (n_cb, K*K*C_in, CBp); rows ordered (kh, kw, ci).
    w = jnp.transpose(weight, (2, 3, 1, 0)).reshape(KKC, C_out)
    w = w.reshape(KKC, n_cb, CB).transpose(1, 0, 2)          # (n_cb, KKC, CB)
    w = jnp.pad(w, ((0, 0), (0, 0), (0, CBp - CB))).astype(jnp.bfloat16)

    fuse_taps = KKC <= 512        # small contraction -> single fused matmul

    # VMEM budget: double-buffered blocks + scratch + in-kernel temporaries, with headroom,
    # capped at 64 MiB so it is safe on v7x's smaller physical VMEM.
    need = (2 * Hp * Wp * C_in * 2            # resident padded input (x2 buffers)
            + 2 * KKC * CBp * 2               # weights
            + 2 * H * W * CB * 4              # resident output block
            + TH * W * (KKC * 2 + 3 * CBp * 4)  # LHS + acc temporaries (rough)
            + 2 * CBp * 4)                    # stats scratch
    vmem_limit = int(min(max(2 * need, 32 << 20), 64 << 20))

    kern = functools.partial(_conv_block_kernel, K=K, TH=TH, W=W, CB=CB, CBp=CBp,
                             c_in=C_in, inv_hw=1.0 / (H * W), fuse_taps=fuse_taps)

    out = pl.pallas_call(
        kern,
        out_shape=jax.ShapeDtypeStruct((N, H, W, C_out), jnp.float32),
        grid_spec=pltpu.PrefetchScalarGridSpec(
            num_scalar_prefetch=0,
            grid=(N, n_cb, n_th),
            in_specs=[
                # whole padded sample, resident across (cb, t) -> DMA'd once per sample
                pl.BlockSpec((1, Hp, Wp, C_in), lambda n, cb, t: (n, 0, 0, 0)),
                # weights for this output-channel block, resident across t
                pl.BlockSpec((1, KKC, CBp), lambda n, cb, t: (cb, 0, 0)),
            ],
            # output block resident across the row-tile axis; written to HBM once per (n, cb)
            out_specs=pl.BlockSpec((1, H, W, CB), lambda n, cb, t: (n, 0, 0, cb)),
            scratch_shapes=[pltpu.VMEM((2, CBp), jnp.float32)],
        ),
        compiler_params=pltpu.CompilerParams(
            dimension_semantics=("parallel", "parallel", "arbitrary"),
            vmem_limit_bytes=vmem_limit),
    )(xp, w)

    return out


def conv_block_forward(x_nchw, weight, bias=None, *, kernel_size=3, padding=1, row_tile=None):
    """PyTorch-layout wrapper: NCHW in / NCHW out (layout converted once at the boundary)."""
    x_nhwc = jnp.transpose(x_nchw, (0, 2, 3, 1))
    y = conv_block_forward_nhwc(x_nhwc, weight, bias, kernel_size=kernel_size,
                                padding=padding, row_tile=row_tile)
    return jnp.transpose(y, (0, 3, 1, 2))


if __name__ == "__main__":
    key = jax.random.PRNGKey(0)
    k_x, k_w, k_b = jax.random.split(key, 3)

    N, C_in, C_out, H, W, K = 2, 4, 8, 16, 16, 3

    x = jax.random.normal(k_x, (N, C_in, H, W), dtype=jnp.float32)
    fan_in = C_in * K * K
    bound = 1.0 / (fan_in ** 0.5)
    weight = jax.random.uniform(k_w, (C_out, C_in, K, K), minval=-bound, maxval=bound,
                                dtype=jnp.float32)
    bias = jax.random.uniform(k_b, (C_out,), minval=-bound, maxval=bound, dtype=jnp.float32)

    # row_tile=8 exercises multi-tile stats accumulation + resident-output normalization.
    y = conv_block_forward(x, weight, bias, kernel_size=K, padding=1, row_tile=8)
    jax.block_until_ready(y)
    assert y.shape == (N, C_out, H, W)

    # Pure-JAX f32 reference of the same forward pass (bias included; it cancels in the norm).
    xp = jnp.pad(x, ((0, 0), (0, 0), (1, 1), (1, 1)), mode="reflect")
    ref = jax.lax.conv_general_dilated(xp, weight, (1, 1), "VALID",
                                       dimension_numbers=("NCHW", "OIHW", "NCHW"),
                                       precision=jax.lax.Precision.HIGHEST)
    ref = ref + bias[None, :, None, None]
    m = ref.mean(axis=(2, 3), keepdims=True)
    v = ((ref - m) ** 2).mean(axis=(2, 3), keepdims=True)
    ref = jnp.maximum((ref - m) * jax.lax.rsqrt(v + EPS), 0.0)

    err = float(jnp.max(jnp.abs(y - ref)))
    assert err < 5e-2, f"max abs err {err}"
    print("KERNEL_OK")
</pallas_src>

<mosaic_0001>
module attributes {stable_mosaic.version = 11 : i64} {
  func.func @_conv_block_kernel(%arg0: i32, %arg1: i32, %arg2: i32, %arg3: memref<1x18x18x4xbf16, #tpu.memory_space<vmem>>, %arg4: memref<1x36x128xbf16, #tpu.memory_space<vmem>>, %arg5: memref<1x16x16x8xf32, #tpu.memory_space<vmem>>, %arg6: memref<2x128xf32, #tpu.memory_space<vmem>>) attributes {dimension_semantics = [#tpu.dimension_semantics<parallel>, #tpu.dimension_semantics<parallel>, #tpu.dimension_semantics<arbitrary>], iteration_bounds = array<i64: 2, 1, 2>, scalar_prefetch = 0 : i64, scratch_operands = 1 : i64, tpu.core_type = #tpu.core_type<tc>, window_params = [{transform_indices = @transform_0, window_bounds = array<i64: 1, 18, 18, 4>}, {transform_indices = @transform_1, window_bounds = array<i64: 1, 36, 128>}, {transform_indices = @transform_2, window_bounds = array<i64: 1, 16, 16, 8>}]} {
    %c0_i32 = arith.constant 0 : i32
    %0 = arith.cmpi eq, %arg2, %c0_i32 : i32
    %1 = arith.extui %0 : i1 to i32
    %c0_i32_0 = arith.constant 0 : i32
    %2 = arith.cmpi ne, %1, %c0_i32_0 : i32
    scf.if %2 {
      %cst_50 = arith.constant 0.000000e+00 : f32
      %66 = vector.broadcast %cst_50 : f32 to vector<2x128xf32>
      %c0_51 = arith.constant 0 : index
      %c0_52 = arith.constant 0 : index
      %67 = vector.load %arg6[%c0_51, %c0_52] : memref<2x128xf32, #tpu.memory_space<vmem>>, vector<2x128xf32>
      tpu.vector_store %arg6[%c0_51, %c0_52], %66 {strides = array<i32>} : memref<2x128xf32, #tpu.memory_space<vmem>>, vector<2x128xf32>,
    } else {
    }
    %c8_i32 = arith.constant 8 : i32
    %3 = arith.muli %arg2, %c8_i32 : i32
    %4 = tpu.assume_multiple %3, 8 : i32
    %c0_i32_1 = arith.constant 0 : i32
    %5 = arith.addi %4, %c0_i32_1 : i32
    %c0 = arith.constant 0 : index
    %6 = arith.index_cast %5 : i32 to index
    %c0_2 = arith.constant 0 : index
    %c0_3 = arith.constant 0 : index
    %7 = vector.load %arg3[%c0, %6, %c0_2, %c0_3] : memref<1x18x18x4xbf16, #tpu.memory_space<vmem>>, vector<1x8x16x4xbf16>
    %8 = vector.shape_cast %7 : vector<1x8x16x4xbf16> to vector<8x16x4xbf16>
    %c0_i32_4 = arith.constant 0 : i32
    %9 = arith.addi %4, %c0_i32_4 : i32
    %c0_5 = arith.constant 0 : index
    %10 = arith.index_cast %9 : i32 to index
    %c1 = arith.constant 1 : index
    %c0_6 = arith.constant 0 : index
    %11 = vector.load %arg3[%c0_5, %10, %c1, %c0_6] : memref<1x18x18x4xbf16, #tpu.memory_space<vmem>>, vector<1x8x16x4xbf16>
    %12 = vector.shape_cast %11 : vector<1x8x16x4xbf16> to vector<8x16x4xbf16>
    %c0_i32_7 = arith.constant 0 : i32
    %13 = arith.addi %4, %c0_i32_7 : i32
    %c0_8 = arith.constant 0 : index
    %14 = arith.index_cast %13 : i32 to index
    %c2 = arith.constant 2 : index
    %c0_9 = arith.constant 0 : index
    %15 = vector.load %arg3[%c0_8, %14, %c2, %c0_9] : memref<1x18x18x4xbf16, #tpu.memory_space<vmem>>, vector<1x8x16x4xbf16>
    %16 = vector.shape_cast %15 : vector<1x8x16x4xbf16> to vector<8x16x4xbf16>
    %c1_i32 = arith.constant 1 : i32
    %17 = arith.addi %4, %c1_i32 : i32
    %c0_10 = arith.constant 0 : index
    %18 = arith.index_cast %17 : i32 to index
    %c0_11 = arith.constant 0 : index
    %c0_12 = arith.constant 0 : index
    %19 = vector.load %arg3[%c0_10, %18, %c0_11, %c0_12] : memref<1x18x18x4xbf16, #tpu.memory_space<vmem>>, vector<1x8x16x4xbf16>
    %20 = vector.shape_cast %19 : vector<1x8x16x4xbf16> to vector<8x16x4xbf16>
    %c1_i32_13 = arith.constant 1 : i32
    %21 = arith.addi %4, %c1_i32_13 : i32
    %c0_14 = arith.constant 0 : index
    %22 = arith.index_cast %21 : i32 to index
    %c1_15 = arith.constant 1 : index
    %c0_16 = arith.constant 0 : index
    %23 = vector.load %arg3[%c0_14, %22, %c1_15, %c0_16] : memref<1x18x18x4xbf16, #tpu.memory_space<vmem>>, vector<1x8x16x4xbf16>
    %24 = vector.shape_cast %23 : vector<1x8x16x4xbf16> to vector<8x16x4xbf16>
    %c1_i32_17 = arith.constant 1 : i32
    %25 = arith.addi %4, %c1_i32_17 : i32
    %c0_18 = arith.constant 0 : index
    %26 = arith.index_cast %25 : i32 to index
    %c2_19 = arith.constant 2 : index
    %c0_20 = arith.constant 0 : index
    %27 = vector.load %arg3[%c0_18, %26, %c2_19, %c0_20] : memref<1x18x18x4xbf16, #tpu.memory_space<vmem>>, vector<1x8x16x4xbf16>
    %28 = vector.shape_cast %27 : vector<1x8x16x4xbf16> to vector<8x16x4xbf16>
    %c2_i32 = arith.constant 2 : i32
    %29 = arith.addi %4, %c2_i32 : i32
    %c0_21 = arith.constant 0 : index
    %30 = arith.index_cast %29 : i32 to index
    %c0_22 = arith.constant 0 : index
    %c0_23 = arith.constant 0 : index
    %31 = vector.load %arg3[%c0_21, %30, %c0_22, %c0_23] : memref<1x18x18x4xbf16, #tpu.memory_space<vmem>>, vector<1x8x16x4xbf16>
    %32 = vector.shape_cast %31 : vector<1x8x16x4xbf16> to vector<8x16x4xbf16>
    %c2_i32_24 = arith.constant 2 : i32
    %33 = arith.addi %4, %c2_i32_24 : i32
    %c0_25 = arith.constant 0 : index
    %34 = arith.index_cast %33 : i32 to index
    %c1_26 = arith.constant 1 : index
    %c0_27 = arith.constant 0 : index
    %35 = vector.load %arg3[%c0_25, %34, %c1_26, %c0_27] : memref<1x18x18x4xbf16, #tpu.memory_space<vmem>>, vector<1x8x16x4xbf16>
    %36 = vector.shape_cast %35 : vector<1x8x16x4xbf16> to vector<8x16x4xbf16>
    %c2_i32_28 = arith.constant 2 : i32
    %37 = arith.addi %4, %c2_i32_28 : i32
    %c0_29 = arith.constant 0 : index
    %38 = arith.index_cast %37 : i32 to index
    %c2_30 = arith.constant 2 : index
    %c0_31 = arith.constant 0 : index
    %39 = vector.load %arg3[%c0_29, %38, %c2_30, %c0_31] : memref<1x18x18x4xbf16, #tpu.memory_space<vmem>>, vector<1x8x16x4xbf16>
    %40 = vector.shape_cast %39 : vector<1x8x16x4xbf16> to vector<8x16x4xbf16>
    %41 = tpu.concatenate %8, %12, %16, %20, %24, %28, %32, %36, %40 in 2 : vector<8x16x4xbf16>, vector<8x16x4xbf16>, vector<8x16x4xbf16>, vector<8x16x4xbf16>, vector<8x16x4xbf16>, vector<8x16x4xbf16>, vector<8x16x4xbf16>, vector<8x16x4xbf16>, vector<8x16x4xbf16> -> vector<8x16x36xbf16>
    %42 = vector.shape_cast %41 : vector<8x16x36xbf16> to vector<128x36xbf16>
    %c0_32 = arith.constant 0 : index
    %c0_33 = arith.constant 0 : index
    %c0_34 = arith.constant 0 : index
    %43 = vector.load %arg4[%c0_32, %c0_33, %c0_34] : memref<1x36x128xbf16, #tpu.memory_space<vmem>>, vector<1x36x128xbf16>
    %44 = vector.shape_cast %43 : vector<1x36x128xbf16> to vector<36x128xbf16>
    %cst = arith.constant dense<0.000000e+00> : vector<128x128xf32>
    %45 = tpu.matmul %42, %44, %cst {dimension_numbers = #tpu.dot_dimension_numbers<[1], [0], [0], [1], [0, 0, 1, 1], [], []>} : vector<128x36xbf16>, vector<36x128xbf16>, vector<128x128xf32> -> vector<128x128xf32>
    %c0_35 = arith.constant 0 : index
    %c0_36 = arith.constant 0 : index
    %46 = vector.load %arg6[%c0_35, %c0_36] : memref<2x128xf32, #tpu.memory_space<vmem>>, vector<1x128xf32>
    %cst_37 = arith.constant dense<0.000000e+00> : vector<128xf32>
    %47 = vector.multi_reduction <add>, %45, %cst_37 [0] : vector<128x128xf32> to vector<128xf32>
    %48 = vector.shape_cast %47 : vector<128xf32> to vector<1x128xf32>
    %49 = arith.addf %46, %48 : vector<1x128xf32>
    %c0_38 = arith.constant 0 : index
    %c0_39 = arith.constant 0 : index
    %50 = vector.load %arg6[%c0_38, %c0_39] : memref<2x128xf32, #tpu.memory_space<vmem>>, vector<1x128xf32>
    tpu.vector_store %arg6[%c0_38, %c0_39], %49 {strides = array<i32>} : memref<2x128xf32, #tpu.memory_space<vmem>>, vector<1x128xf32>,
    %c1_40 = arith.constant 1 : index
    %c0_41 = arith.constant 0 : index
    %51 = vector.load %arg6[%c1_40, %c0_41] : memref<2x128xf32, #tpu.memory_space<vmem>>, vector<1x128xf32>
    %52 = arith.mulf %45, %45 : vector<128x128xf32>
    %cst_42 = arith.constant dense<0.000000e+00> : vector<128xf32>
    %53 = vector.multi_reduction <add>, %52, %cst_42 [0] : vector<128x128xf32> to vector<128xf32>
    %54 = vector.shape_cast %53 : vector<128xf32> to vector<1x128xf32>
    %55 = arith.addf %51, %54 : vector<1x128xf32>
    %c1_43 = arith.constant 1 : index
    %c0_44 = arith.constant 0 : index
    %56 = vector.load %arg6[%c1_43, %c0_44] : memref<2x128xf32, #tpu.memory_space<vmem>>, vector<1x128xf32>
    tpu.vector_store %arg6[%c1_43, %c0_44], %55 {strides = array<i32>} : memref<2x128xf32, #tpu.memory_space<vmem>>, vector<1x128xf32>,
    %57 = vector.extract_strided_slice %45 {offsets = [0, 0], sizes = [128, 8], strides = [1, 1]} : vector<128x128xf32> to vector<128x8xf32>
    %58 = vector.shape_cast %57 : vector<128x8xf32> to vector<8x16x8xf32>
    %c0_45 = arith.constant 0 : index
    %59 = arith.index_cast %4 : i32 to index
    %c0_46 = arith.constant 0 : index
    %c0_47 = arith.constant 0 : index
    %60 = vector.load %arg5[%c0_45, %59, %c0_46, %c0_47] : memref<1x16x16x8xf32, #tpu.memory_space<vmem>>, vector<1x8x16x8xf32>
    %61 = vector.shape_cast %60 : vector<1x8x16x8xf32> to vector<8x16x8xf32>
    %62 = vector.shape_cast %58 : vector<8x16x8xf32> to vector<1x8x16x8xf32>
    tpu.vector_store %arg5[%c0_45, %59, %c0_46, %c0_47], %62 {strides = array<i32>} : memref<1x16x16x8xf32, #tpu.memory_space<vmem>>, vector<1x8x16x8xf32>,
    %c1_i32_48 = arith.constant 1 : i32
    %63 = arith.cmpi eq, %arg2, %c1_i32_48 : i32
    %64 = arith.extui %63 : i1 to i32
    %c0_i32_49 = arith.constant 0 : i32
    %65 = arith.cmpi ne, %64, %c0_i32_49 : i32
    scf.if %65 {
      %c0_50 = arith.constant 0 : index
      %c0_51 = arith.constant 0 : index
      %66 = vector.load %arg6[%c0_50, %c0_51] : memref<2x128xf32, #tpu.memory_space<vmem>>, vector<1x8xf32>
      %cst_52 = arith.constant 3.906250e-03 : f32
      %67 = vector.broadcast %cst_52 : f32 to vector<1x8xf32>
      %68 = arith.mulf %66, %67 : vector<1x8xf32>
      %c1_53 = arith.constant 1 : index
      %c0_54 = arith.constant 0 : index
      %69 = vector.load %arg6[%c1_53, %c0_54] : memref<2x128xf32, #tpu.memory_space<vmem>>, vector<1x8xf32>
      %cst_55 = arith.constant 3.906250e-03 : f32
      %70 = vector.broadcast %cst_55 : f32 to vector<1x8xf32>
      %71 = arith.mulf %69, %70 : vector<1x8xf32>
      %72 = arith.mulf %68, %68 : vector<1x8xf32>
      %73 = arith.subf %71, %72 : vector<1x8xf32>
      %cst_56 = arith.constant 0.000000e+00 : f32
      %74 = vector.broadcast %cst_56 : f32 to vector<1x8xf32>
      %75 = arith.maximumf %73, %74 : vector<1x8xf32>
      %cst_57 = arith.constant 9.99999974E-6 : f32
      %76 = vector.broadcast %cst_57 : f32 to vector<1x8xf32>
      %77 = arith.addf %75, %76 : vector<1x8xf32>
      %78 = math.rsqrt %77 : vector<1x8xf32>
      %c0_58 = arith.constant 0 : index
      %c0_59 = arith.constant 0 : index
      %c0_60 = arith.constant 0 : index
      %c0_61 = arith.constant 0 : index
      %79 = vector.load %arg5[%c0_58, %c0_59, %c0_60, %c0_61] : memref<1x16x16x8xf32, #tpu.memory_space<vmem>>, vector<1x16x16x8xf32>
      %80 = vector.shape_cast %79 : vector<1x16x16x8xf32> to vector<16x16x8xf32>
      %81 = vector.shape_cast %68 : vector<1x8xf32> to vector<1x1x8xf32>
      %82 = vector.broadcast %81 : vector<1x1x8xf32> to vector<16x16x8xf32>
      %83 = arith.subf %80, %82 : vector<16x16x8xf32>
      %84 = vector.shape_cast %78 : vector<1x8xf32> to vector<1x1x8xf32>
      %85 = vector.broadcast %84 : vector<1x1x8xf32> to vector<16x16x8xf32>
      %86 = arith.mulf %83, %85 : vector<16x16x8xf32>
      %cst_62 = arith.constant 0.000000e+00 : f32
      %87 = vector.broadcast %cst_62 : f32 to vector<16x16x8xf32>
      %88 = arith.maximumf %86, %87 : vector<16x16x8xf32>
      %c0_63 = arith.constant 0 : index
      %c0_64 = arith.constant 0 : index
      %c0_65 = arith.constant 0 : index
      %c0_66 = arith.constant 0 : index
      %89 = vector.load %arg5[%c0_63, %c0_64, %c0_65, %c0_66] : memref<1x16x16x8xf32, #tpu.memory_space<vmem>>, vector<1x16x16x8xf32>
      %90 = vector.shape_cast %89 : vector<1x16x16x8xf32> to vector<16x16x8xf32>
      %91 = vector.shape_cast %88 : vector<16x16x8xf32> to vector<1x16x16x8xf32>
      tpu.vector_store %arg5[%c0_63, %c0_64, %c0_65, %c0_66], %91 {strides = array<i32>} : memref<1x16x16x8xf32, #tpu.memory_space<vmem>>, vector<1x16x16x8xf32>,
    } else {
    }
    return
  }
  func.func @transform_0(%arg0: i32, %arg1: i32, %arg2: i32) -> (i32, i32, i32, i32) {
    %c0_i32 = arith.constant 0 : i32
    %c0_i32_0 = arith.constant 0 : i32
    %c0_i32_1 = arith.constant 0 : i32
    %c0_i32_2 = arith.constant 0 : i32
    return %arg0, %c0_i32, %c0_i32_0, %c0_i32_1 : i32, i32, i32, i32
  }
  func.func @transform_1(%arg0: i32, %arg1: i32, %arg2: i32) -> (i32, i32, i32) {
    %c0_i32 = arith.constant 0 : i32
    %c0_i32_0 = arith.constant 0 : i32
    %c0_i32_1 = arith.constant 0 : i32
    return %arg1, %c0_i32, %c0_i32_0 : i32, i32, i32
  }
  func.func @transform_2(%arg0: i32, %arg1: i32, %arg2: i32) -> (i32, i32, i32, i32) {
    %c0_i32 = arith.constant 0 : i32
    %c0_i32_0 = arith.constant 0 : i32
    %c0_i32_1 = arith.constant 0 : i32
    return %arg0, %c0_i32, %c0_i32_0, %arg1 : i32, i32, i32, i32
  }
}

</mosaic_0001>

<bundles_post_ra>
// kernel: tpu_custom_call.1
= control target key start
LH: loop header
LB: loop body
LE: loop exit
PB: predicated region body
PF: predicated region fallthrough
CT: control target
= control target key end

     0   :  { %s2110_s9 = smov 0   ;;  %s2112_s10 = smov 0   ;;  %s2946_s0 = inlined_call_operand.vmem [shape: bf16[2,18,18,4], index: 0, kind: input, shape index: {}]   ;;  %s2947_s1 = inlined_call_operand.vmem [shape: bf16[1,36,128], index: 1, kind: input, shape index: {}]   ;;  %s2948_s2 = inlined_call_operand.vmem [shape: f32[2,16,16,8], index: 2, kind: output, shape index: {}]  }
   0x1   :  { %s2114_s11 = smov 0   ;;  %s2116_s12 = smov 0  }
   0x2   :  { %s2118_s13 = smov 0  }
   0x3 LB: > { %s24_s14 = sadd.s32 1, %s2076_s11  ;;  %s31_s15 = sadd.s32 1, %s2080_s12  ;;  %s2084_s13 = sphi %s2118_s13, %s12_s13   ;;  %s2080_s12 = sphi %s2116_s12, %s2952_s12   ;;  %s2076_s11 = sphi %s2114_s11, %s2951_s11   ;;  %s2072_s10 = sphi %s2112_s10, %s2950_s10   ;;  %s2068_s9 = sphi %s2110_s9, %s2949_s9  }
   0x4   : > { %p25_p0 = scmp.ge.s32.totalorder %s24_s14, 2  ;;  %p1712_p1 = scmp.ge.s32.totalorder %s2084_s13, 1 }
   0x5   : > { %p143_p2 = scmp.lt.s32.totalorder %s2084_s13, 5 }
   0x6   : > { %s2954_s14 = smov (%p25_p0, %s24_s14), 0  ;;  %s2956_s15 = smov (!%p25_p0, %s31_s15), %s2080_s12 }
   0x7   : > { %p144_p3 = pnand %p1712_p1, %p143_p2  ;;  %p33_p4 = scmp.ge.s32.totalorder %s2956_s15, 2 }
   0x8   : > { %p173_p5 = scmp.lt.s32.totalorder (!%p144_p3), %s2072_s10, 1  ;;  %p1716_p6 = scmp.ne.s32.totalorder (!%p144_p3), %s2068_s9, 0 }
   0x9   : > { %s2958_s15 = smov (%p33_p4, %s2956_s15), 0  ;;  %147 = sbr.rel (%p144_p3) target bundleno = 563 (0x233), region = 28 }
  0x10   : > { %s2960_s10 = smov (!%p173_p5, %s2072_s10), 1  ;;  %195 = sbr.rel (%p1716_p6) target bundleno = 23 (0x17), region = 32 }
  0x11   : > { %s1919_s16 = smul.u32 216, %s2960_s10  ;;  %s1875_s17 = sshll.u32 %s2960_s10, 8  ;;  %v2086_v0 = vmov (!%p1716_p6), 0.0  }
  0x12   : > { %s2145_s20 = scalar_lea.vmem %s2948_s2, %s1875_s17  ;;  %196 = vst [vmem:[#allocation2] sm:$0x3] (!%p1716_p6), %v2086_v0 }
  0x13   : > { %s177_s23 = scalar_lea.vmem %s2946_s0, %s1919_s16 }
  0x17 PF: > { %s1876_s24 = smul.u32 96, %s2068_s9  ;;  %vm506_vm0 = vcmask 1046528   ;;  %vm369_vm1 = vsmask.f32 7424  ;;  %s2087_s26 = smov 12   ;;  %vm1232_vm2 = vcmask 1041408  }
  0x18   : > { %s2088_s27 = smov 8   ;;  %s2089_s28 = smov 4   ;;  %vm1059_vm3 = vcmask 31744   ;;  %vm1076_vm4 = vcmask 64512   ;;  %vm1093_vm5 = vcmask 97280   ;;  %vm1110_vm6 = vcmask 130048  }
  0x19   : > { %s2152_s25 = scalar_lea.vmem %s177_s23, %s1876_s24  ;;  %s2090_s3 = smov 16   ;;  %vm1127_vm7 = vcmask 162816   ;;  %vm1144_vm8 = vcmask 195584   ;;  %vm1178_vm9 = vcmask 261120   ;;  %vm1161_vm10 = vcmask 228352  }
  0x1a   : > { %v1724_v1 = vld [vmem:[%s2152_s25 + $0x18] sm:$0xf]  ;;  %v2156_v2 = vld [vmem:[%s2152_s25 + $0x1c] sm:$0xf]  ;;  %v1722_v4 = vld [vmem:[%s2152_s25 + $0xc] sm:$0xf] }
  0x1b   : > { %v1813_v3 = vcombine.low %v1724_v1, %v2156_v2  ;;  %v2161_v5 = vld [vmem:[%s2152_s25 + $0x10] sm:$0xf]  ;;  %v202_v7 = vld [vmem:[%s2152_s25 + $0x4] sm:$0xf]  ;;  %v225_v8 = vld [vmem:[%s2152_s25] sm:$0xe] }
  0x1c   : > { %v1812_v6 = vcombine.low %v1722_v4, %v2161_v5  ;;  %v1747_v9 = vld [vmem:[%s2152_s25 + $0x18] sm:$0xe]  ;;  %v1973_v11 = vld [vmem:[%s2152_s25 + $0x8] ss:$0 sps:$4 sm:$0x11]   ;;  %v1804_v12 = vcombine.low %v225_v8, %v202_v7  ;;  %s2091_s4 = smov 20  }
  0x1d   : > { %589 = vrot.lane.b32.xlu1 %v1813_v3, %s2087_s26  ;;  %v642_v10 = vshll.u32 %v1813_v3, 16  ;;  %v201_v13 = vld [vmem:[%s2152_s25] sm:$0xf]  ;;  %v203_v16 = vld [vmem:[%s2152_s25 + $0xc] sm:$0xf]  ;;  %v640_v18 = vshrl.u32 %v1813_v3, 16  ;;  %v1829_v31 = vcombine.low %v1747_v9, %v2156_v2 }
  0x1e   : > { %587 = vrot.lane.b32.xlu0 %v1812_v6, %s2087_s26  ;;  %v630_v14 = vshll.u32 %v1812_v6, 16  ;;  %v2171_v15 = vcombine.low %v201_v13, %v202_v7  ;;  %v204_v17 = vld [vmem:[%s2152_s25 + $0x10] sm:$0xf]  ;;  %v507_v19 = vrot.slane %v1804_v12, 1  ;;  %v508_v20 = vrot.slane %v1973_v11, 1  ;;  %v2041_v3 = vld [vmem:[%s2947_s1] sm:$0xff]  }
  0x1f   : > { %v378_v21 = vshll.u32 %v1973_v11, 16  ;;  %v2175_v22 = vcombine.low %v203_v16, %v204_v17  ;;  %v226_v25 = vld [vmem:[%s2152_s25 + $0xc] sm:$0xe]  ;;  %v1977_v28 = vld [vmem:[%s2152_s25 + $0x14] ss:$0 sps:$4 sm:$0x11]   ;;  %1889 = vmatprep.subr.bf16.mxu0 %v2041_v3  ;;  %1911 = vmatprep.subr.bf16.mxu1 %v2041_v3 }
  0x20   : > { %v371_v23 = vshrl.u32 %v2171_v15, 16  ;;  %v373_v24 = vshll.u32 %v2171_v15, 16  ;;  %v509_v26 = vsel %vm506_vm0, %v507_v19, %v508_v20  ;;  %v1805_v29 = vcombine.low %v226_v25, %v204_v17  ;;  %v1746_v32 = vld [vmem:[%s2152_s25 + $0xc] sm:$0xe]  ;;  %v1758_v49 = vld [vmem:[%s2152_s25 + $0x24] sm:$0xf]  ;;  %1890 = vmatpush3.bf16.msra.mxu0 %v2041_v3  ;;  %1914 = vmatpush3.bf16.msra.mxu1 %v2041_v3 }
  0x21   : > { %v380_v27 = vrot.slane %v378_v21, 1  ;;  %v383_v30 = vshrl.u32 %v2175_v22, 16  ;;  %531 = vrot.lane.b32.xlu1 %v509_v26, %s2088_s27  ;;  %v385_v34 = vshll.u32 %v2175_v22, 16  ;;  %v1979_v35 = vld [vmem:[%s2152_s25 + $0x20] ss:$0 sps:$4 sm:$0x11]   ;;  %v1828_v55 = vcombine.low %v1746_v32, %v2161_v5 }
  0x22   : > { %v375_v33 = vrot.slane %v373_v24, 1  ;;  %v644_v36 = vrot.slane %v642_v10, 1  ;;  %v510_v37 = vrot.slane %v1805_v29, 1  ;;  %v511_v38 = vrot.slane %v1977_v28, 1  ;;  %v2194_v54 = vld [vmem:[%s2152_s25 + $0x28] sm:$0xf] }
  0x23   : > { %v390_v39 = vshll.u32 %v1977_v28, 16  ;;  %v628_v40 = vshrl.u32 %v1812_v6, 16  ;;  %v387_v42 = vrot.slane %v385_v34, 1  ;;  %v647_v44 = vshll.u32 %v1979_v35, 16  ;;  %v1756_v59 = vld [vmem:[%s2152_s25 + $0x18] sm:$0xf] }
  0x24   : > { %v376_v41 = vor.u32 %v375_v33, %v371_v23  ;;  %v645_v43 = vor.u32 %v644_v36, %v640_v18  ;;  %v1980_v45 = vld [vmem:[%s2152_s25 + $0x14] ss:$0 sps:$4 sm:$0x11]   ;;  %v512_v46 = vsel %vm506_vm0, %v510_v37, %v511_v38  ;;  %v632_v48 = vrot.slane %v630_v14, 1  ;;  %v2203_v0 = vld [vmem:[%s2152_s25 + $0x1c] sm:$0xf] }
  0x25   : > { %v392_v47 = vrot.slane %v390_v39, 1  ;;  %533 = vrot.lane.b32.xlu1 %v512_v46, %s2088_s27  ;;  %v388_v51 = vor.u32 %v387_v42, %v383_v30  ;;  %v649_v52 = vrot.slane %v647_v44, 1  ;;  %v635_v53 = vshll.u32 %v1980_v45, 16  ;;  %v2209_v2 = vld [vmem:[%s2152_s25 + $0x2c] ss:$0 sps:$4 sm:$0x11]  }
  0x26   : > { %v381_v50 = vsel %vm369_vm1, %v376_v41, %v380_v27  ;;  %v633_v56 = vor.u32 %v632_v48, %v628_v40  ;;  %v766_v57 = vrot.slane %v1829_v31, 1  ;;  %v767_v58 = vrot.slane %v1979_v35, 1  ;;  %v205_v6 = vld [vmem:[%s2152_s25 + $0x18] sm:$0xf]  ;;  %v2225_v16 = vld [vmem:[%s2152_s25 + $0x1c] sm:$0xf] }
  0x27   : > { %466 = vrot.lane.b32.xlu0 %v381_v50, %s2089_s28  ;;  %v393_v60 = vsel %vm369_vm1, %v388_v51, %v392_v47  ;;  %v650_v61 = vsel %vm369_vm1, %v645_v43, %v649_v52  ;;  %v637_v62 = vrot.slane %v635_v53, 1  ;;  %v1837_v63 = vcombine.low %v1758_v49, %v2194_v54  ;;  %v2220_v11 = vld [vmem:[%s2152_s25 + $0x20] ss:$0 sps:$4 sm:$0x11]   ;;  %v207_v21 = vld [vmem:[%s2152_s25 + $0x24] sm:$0xf] }
  0x28   : > { %v2206_v1 = vcombine.low %v1756_v59, %v2203_v0  ;;  %v768_v7 = vsel %vm506_vm0, %v766_v57, %v767_v58  ;;  %v763_v8 = vrot.slane %v1828_v55, 1  ;;  %v764_v9 = vrot.slane %v1980_v45, 1  ;;  %v2231_v18 = vld [vmem:[%s2152_s25 + $0x20] ss:$0 sps:$4 sm:$0x11]   ;;  %v2042_v28 = vld [vmem:[%s2947_s1 + $0x8] sm:$0xff]  }
  0x29   : > { %725 = vrot.lane.b32.xlu1 %v650_v61, %s2090_s3  ;;  %v898_v4 = vshll.u32 %v1837_v63, 16  ;;  %v896_v5 = vshrl.u32 %v1837_v63, 16  ;;  %v903_v10 = vshll.u32 %v2209_v2, 16  ;;  %v638_v12 = vsel %vm369_vm1, %v633_v56, %v637_v62  ;;  %v208_v23 = vld [vmem:[%s2152_s25 + $0x28] sm:$0xf]  ;;  %1891 = vmatprep.subr.bf16.mxu0 %v2042_v28  ;;  %s2092_s7 = smov 24  }
  0x2a   : > { %v886_v13 = vshll.u32 %v2206_v1, 16  ;;  %v2228_v17 = vcombine.low %v205_v6, %v2225_v16  ;;  %v765_v24 = vsel %vm506_vm0, %v763_v8, %v764_v9  ;;  %v884_v25 = vshrl.u32 %v2206_v1, 16  ;;  %v1990_v33 = vld [vmem:[%s2152_s25 + $0x2c] ss:$0 sps:$4 sm:$0x11]   ;;  %1912 = vmatprep.subr.bf16.mxu1 %v2042_v28  ;;  %1892 = vmatpush3.bf16.msra.mxu0 %v2042_v28  ;;  %s2093_s8 = smov 28  }
  0x2b   : > { %468 = vrot.lane.b32.xlu0 %v393_v60, %s2089_s28  ;;  %v900_v14 = vrot.slane %v898_v4, 1  ;;  %v905_v20 = vrot.slane %v903_v10, 1  ;;  %v891_v30 = vshll.u32 %v2220_v11, 16  ;;  %v402_v31 = vshll.u32 %v2231_v18, 16  ;;  %v1780_v34 = vld [vmem:[%s2152_s25 + $0x18] sm:$0xe]  ;;  %1915 = vmatpush3.bf16.msra.mxu1 %v2042_v28 }
  0x2c   : > { %v395_v26 = vshrl.u32 %v2228_v17, 16  ;;  %v397_v27 = vshll.u32 %v2228_v17, 16  ;;  %v888_v29 = vrot.slane %v886_v13, 1  ;;  %v2246_v32 = vcombine.low %v207_v21, %v208_v23  ;;  %v1781_v36 = vld [vmem:[%s2152_s25 + $0x24] sm:$0xe]  ;;  %s2094_s10 = smov 32  }
  0x2d   : > { %789 = vrot.lane.b32.xlu1 %v768_v7, %s2091_s4  ;;  %v901_v19 = vor.u32 %v900_v14, %v896_v5  ;;  %v404_v40 = vrot.slane %v402_v31, 1  ;;  %v414_v42 = vshll.u32 %v1990_v33, 16  ;;  %v228_v43 = vld [vmem:[%s2152_s25 + $0x24] sm:$0xe]  ;;  %v1852_v44 = vcombine.low %v1780_v34, %v2203_v0  ;;  %v1728_v48 = vld [vmem:[%s2152_s25 + $0x30] sm:$0xf] }
  0x2e   : > { %v399_v35 = vrot.slane %v397_v27, 1  ;;  %v409_v38 = vshll.u32 %v2246_v32, 16  ;;  %v407_v41 = vshrl.u32 %v2246_v32, 16  ;;  %v889_v45 = vor.u32 %v888_v29, %v884_v25  ;;  %v2260_v49 = vld [vmem:[%s2152_s25 + $0x34] sm:$0xf]  ;;  %s1877_s18 = sshll.u32 %s2068_s9, 7 }
  0x2f   : > { %723 = vrot.lane.b32.xlu0 %v638_v12, %s2090_s3  ;;  %v906_v37 = vsel %vm369_vm1, %v901_v19, %v905_v20  ;;  %v893_v46 = vrot.slane %v891_v30, 1  ;;  %v1853_v50 = vcombine.low %v1781_v36, %v2194_v54  ;;  %v1807_v51 = vcombine.low %v228_v43, %v208_v23  ;;  %v227_v54 = vld [vmem:[%s2152_s25 + $0x18] sm:$0xe]  ;;  %v1726_v60 = vld [vmem:[%s2152_s25 + $0x24] sm:$0xf]  ;;  %s2585_s19 = scalar_lea.vmem %s2145_s20, %s1877_s18  ;;  %p1872_p7 = scmp.ne.s32.totalorder %s2068_s9, 1 }
  0x30   : > { %v400_v39 = vor.u32 %v399_v35, %v395_v26  ;;  %v411_v47 = vrot.slane %v409_v38, 1  ;;  %v416_v55 = vrot.slane %v414_v42, 1  ;;  %v1815_v56 = vcombine.low %v1728_v48, %v2260_v49  ;;  %v2273_v61 = vld [vmem:[%s2152_s25 + $0x28] sm:$0xf]  ;;  %v1749_v9 = vld [vmem:[%s2152_s25 + $0x30] sm:$0xe] }
  0x31   : > { %845 = vrot.lane.b32.xlu1 %v1837_v63, %s2092_s7  ;;  %v894_v57 = vsel %vm369_vm1, %v889_v45, %v893_v46  ;;  %v1019_v58 = vrot.slane %v1852_v44, 1  ;;  %v1020_v59 = vrot.slane %v2220_v11, 1  ;;  %v1022_v62 = vrot.slane %v1853_v50, 1  ;;  %v1997_v4 = vld [vmem:[%s2152_s25 + $0x38] ss:$0 sps:$4 sm:$0x11]  }
  0x32   : > { %v405_v52 = vsel %vm369_vm1, %v400_v39, %v404_v40  ;;  %v412_v53 = vor.u32 %v411_v47, %v407_v41  ;;  %v516_v63 = vrot.slane %v1807_v51, 1  ;;  %v517_v0 = vrot.slane %v1990_v33, 1  ;;  %v1762_v11 = vld [vmem:[%s2152_s25 + $0x3c] sm:$0xf]  ;;  %v1748_v26 = vld [vmem:[%s2152_s25 + $0x24] sm:$0xe] }
  0x33   : > { %787 = vrot.lane.b32.xlu0 %v765_v24, %s2091_s4  ;;  %v666_v3 = vshll.u32 %v1815_v56, 16  ;;  %v1021_v5 = vsel %vm506_vm0, %v1019_v58, %v1020_v59  ;;  %v1023_v6 = vrot.slane %v2209_v2, 1  ;;  %v1806_v7 = vcombine.low %v227_v54, %v2225_v16  ;;  %v2289_v2 = vld [vmem:[%s2152_s25 + $0x40] sm:$0xf]  ;;  %v1760_v30 = vld [vmem:[%s2152_s25 + $0x30] sm:$0xf] }
  0x34   : > { %v1814_v8 = vcombine.low %v1726_v60, %v2273_v61  ;;  %v664_v10 = vshrl.u32 %v1815_v56, 16  ;;  %v518_v12 = vsel %vm506_vm0, %v516_v63, %v517_v0  ;;  %v671_v14 = vshll.u32 %v1997_v4, 16  ;;  %v1998_v23 = vld [vmem:[%s2152_s25 + $0x2c] ss:$0 sps:$4 sm:$0x11]  }
  0x35   : > { %981 = vrot.lane.b32.xlu1 %v906_v37, %s2093_s8  ;;  %v668_v13 = vrot.slane %v666_v3, 1  ;;  %v1024_v16 = vsel %vm506_vm0, %v1022_v62, %v1023_v6  ;;  %v513_v19 = vrot.slane %v1806_v7, 1  ;;  %v514_v20 = vrot.slane %v2231_v18, 1  ;;  %v209_v34 = vld [vmem:[%s2152_s25 + $0x30] sm:$0xf] }
  0x36   : > { %v654_v21 = vshll.u32 %v1814_v8, 16  ;;  %v1839_v24 = vcombine.low %v1762_v11, %v2289_v2  ;;  %v1831_v25 = vcombine.low %v1749_v9, %v2260_v49  ;;  %v673_v28 = vrot.slane %v671_v14, 1  ;;  %v2303_v35 = vld [vmem:[%s2152_s25 + $0x34] sm:$0xf]  ;;  %v211_v47 = vld [vmem:[%s2152_s25 + $0x3c] sm:$0xf] }
  0x37   : > { %843 = vrot.lane.b32.xlu0 %v2206_v1, %s2092_s7  ;;  %v417_v1 = vsel %vm369_vm1, %v412_v53, %v416_v55  ;;  %v669_v27 = vor.u32 %v668_v13, %v664_v10  ;;  %v652_v29 = vshrl.u32 %v1814_v8, 16  ;;  %v515_v18 = vsel %vm506_vm0, %v513_v19, %v514_v20  ;;  %v1761_v36 = vld [vmem:[%s2152_s25 + $0x34] sm:$0xf]  ;;  %v2307_v37 = vld [vmem:[%s2152_s25 + $0x44] ss:$0 sps:$4 sm:$0x11]  }
  0x38   : > { %v656_v31 = vrot.slane %v654_v21, 1  ;;  %v659_v33 = vshll.u32 %v1998_v23, 16  ;;  %v922_v38 = vshll.u32 %v1839_v24, 16  ;;  %v772_v40 = vrot.slane %v1831_v25, 1  ;;  %v2318_v48 = vld [vmem:[%s2152_s25 + $0x40] sm:$0xf] }
  0x39   : > { %470 = vrot.lane.b32.xlu1 %v405_v52, %s2089_s28  ;;  %v674_v39 = vsel %vm369_vm1, %v669_v27, %v673_v28  ;;  %v773_v41 = vrot.slane %v1997_v4, 1  ;;  %v2313_v42 = vcombine.low %v209_v34, %v2303_v35  ;;  %v1830_v43 = vcombine.low %v1748_v26, %v2273_v61  ;;  %v2323_v52 = vld [vmem:[%s2152_s25 + $0x38] ss:$0 sps:$4 sm:$0x11]   ;;  %v1782_v61 = vld [vmem:[%s2152_s25 + $0x30] sm:$0xe] }
  0x3a   : > { %v657_v44 = vor.u32 %v656_v31, %v652_v29  ;;  %v661_v45 = vrot.slane %v659_v33, 1  ;;  %v1838_v46 = vcombine.low %v1760_v30, %v1761_v36  ;;  %v920_v49 = vshrl.u32 %v1839_v24, 16  ;;  %v2004_v60 = vld [vmem:[%s2152_s25 + $0x38] ss:$0 sps:$4 sm:$0x11]  }
  0x3b   : > { %979 = vrot.lane.b32.xlu0 %v894_v57, %s2093_s8  ;;  %v927_v50 = vshll.u32 %v2307_v37, 16  ;;  %v924_v51 = vrot.slane %v922_v38, 1  ;;  %v774_v53 = vsel %vm506_vm0, %v772_v40, %v773_v41  ;;  %v421_v55 = vshll.u32 %v2313_v42, 16  ;;  %v230_v13 = vld [vmem:[%s2152_s25 + $0x3c] sm:$0xe] }
  0x3c   : > { %v662_v57 = vsel %vm369_vm1, %v657_v44, %v661_v45  ;;  %v769_v58 = vrot.slane %v1830_v43, 1  ;;  %v770_v59 = vrot.slane %v1998_v23, 1  ;;  %v910_v54 = vshll.u32 %v1838_v46, 16  ;;  %v1732_v25 = vld [vmem:[%s2152_s25 + $0x48] sm:$0xf] }
  0x3d   : > { %472 = vrot.lane.b32.xlu1 %v417_v1, %s2089_s28  ;;  %v925_v62 = vor.u32 %v924_v51, %v920_v49  ;;  %v929_v63 = vrot.slane %v927_v50, 1  ;;  %v426_v0 = vshll.u32 %v2323_v52, 16  ;;  %v2008_v1 = vld [vmem:[%s2152_s25 + $0x44] ss:$0 sps:$4 sm:$0x11]   ;;  %v419_v3 = vshrl.u32 %v2313_v42, 16 }
  0x3e   : > { %v423_v4 = vrot.slane %v421_v55, 1  ;;  %v771_v6 = vsel %vm506_vm0, %v769_v58, %v770_v59  ;;  %v908_v7 = vshrl.u32 %v1838_v46, 16  ;;  %v915_v9 = vshll.u32 %v2004_v60, 16  ;;  %v2348_v26 = vld [vmem:[%s2152_s25 + $0x4c] sm:$0xf] }
  0x3f   : > { %1043 = vrot.lane.b32.xlu0 %v1021_v5, %s2094_s10  ;;  %v1854_v10 = vcombine.low %v1782_v61, %v1761_v36  ;;  %v930_v11 = vsel %vm369_vm1, %v925_v62, %v929_v63  ;;  %v438_v20 = vshll.u32 %v2008_v1, 16  ;;  %v1026_v28 = vrot.slane %v2004_v60, 1  ;;  %v229_v38 = vld [vmem:[%s2152_s25 + $0x30] sm:$0xe]  ;;  %v2361_v40 = vld [vmem:[%s2152_s25 + $0x40] sm:$0xf] }
  0x40   : > { %v424_v14 = vor.u32 %v423_v4, %v419_v3  ;;  %v917_v23 = vrot.slane %v915_v9, 1  ;;  %v1809_v29 = vcombine.low %v230_v13, %v2318_v48  ;;  %v1817_v33 = vcombine.low %v1732_v25, %v2348_v26  ;;  %v1751_v51 = vld [vmem:[%s2152_s25 + $0x48] sm:$0xe]  ;;  %v1766_v59 = vld [vmem:[%s2152_s25 + $0x54] sm:$0xf] }
  0x41   : > { %537 = vrot.lane.b32.xlu1 %v518_v12, %s2088_s27  ;;  %v428_v12 = vrot.slane %v426_v0, 1  ;;  %v1025_v27 = vrot.slane %v1854_v10, 1  ;;  %v440_v31 = vrot.slane %v438_v20, 1  ;;  %v523_v45 = vrot.slane %v2008_v1, 1  ;;  %v1750_v1 = vld [vmem:[%s2152_s25 + $0x3c] sm:$0xe] }
  0x42   : > { %v522_v44 = vrot.slane %v1809_v29, 1  ;;  %v1808_v49 = vcombine.low %v229_v38, %v2303_v35  ;;  %v520_v60 = vrot.slane %v2323_v52, 1  ;;  %v2016_v62 = vld [vmem:[%s2152_s25 + $0x44] ss:$0 sps:$4 sm:$0x11]   ;;  %v1833_v0 = vcombine.low %v1751_v51, %v2348_v26 }
  0x43   : > { %1045 = vrot.lane.b32.xlu0 %v1024_v16, %s2094_s10  ;;  %v429_v30 = vsel %vm369_vm1, %v424_v14, %v428_v12  ;;  %v1027_v41 = vsel %vm506_vm0, %v1025_v27, %v1026_v28  ;;  %v2390_v9 = vld [vmem:[%s2152_s25 + $0x4c] sm:$0xf]  ;;  %v1764_v10 = vld [vmem:[%s2152_s25 + $0x48] sm:$0xf]  ;;  %v215_v27 = vld [vmem:[%s2152_s25 + $0x54] sm:$0xf] }
  0x44   : > { %v524_v55 = vsel %vm506_vm0, %v522_v44, %v523_v45  ;;  %v519_v35 = vrot.slane %v1808_v49, 1  ;;  %v2398_v13 = vld [vmem:[%s2152_s25 + $0x5c] ss:$0 sps:$4 sm:$0x11]   ;;  %v2412_v28 = vld [vmem:[%s2152_s25 + $0x58] sm:$0xf] }
  0x45   : > { %593 = vrot.lane.b32.xlu1 %v1815_v56, %s2087_s26  ;;  %v2329_v56 = vcombine.low %v211_v47, %v2318_v48  ;;  %v1029_v48 = vrot.slane %v2307_v37, 1  ;;  %v2425_v38 = vcombine.low %v215_v27, %v2412_v28  ;;  %v2022_v44 = vld [vmem:[%s2152_s25 + $0x50] ss:$0 sps:$4 sm:$0x11]   ;;  %vm1215_vm11 = vcmask 293888  }
  0x46   : > { %v2026_v49 = vld [vmem:[%s2152_s25 + $0x5c] ss:$0 sps:$4 sm:$0x11]  }
  0x47   : > { %535 = vrot.lane.b32.xlu0 %v515_v18, %s2088_s27  ;;  %v433_v5 = vshll.u32 %v2329_v56, 16  ;;  %v431_v16 = vshrl.u32 %v2329_v56, 16 }
  0x49   : > { %729 = vrot.lane.b32.xlu1 %v674_v39, %s2090_s3  ;;  %v435_v19 = vrot.slane %v433_v5, 1  ;;  %v1730_v39 = vld [vmem:[%s2152_s25 + $0x3c] sm:$0xf] }
  0x4a   : > { %v1816_v50 = vcombine.low %v1730_v39, %v2361_v40 }
  0x4b   : > { %591 = vrot.lane.b32.xlu0 %v1814_v8, %s2087_s26  ;;  %v912_v8 = vrot.slane %v910_v54, 1  ;;  %v436_v18 = vor.u32 %v435_v19, %v431_v16  ;;  %v2377_v54 = vld [vmem:[%s2152_s25 + $0x58] sm:$0xf]  ;;  %v778_v16 = vrot.slane %v1833_v0, 1  ;;  %v232_v0 = vld [vmem:[%s2152_s25 + $0x54] sm:$0xe] }
  0x4c   : > { %v678_v61 = vshll.u32 %v1816_v50, 16  ;;  %v1841_v63 = vcombine.low %v1766_v59, %v2377_v54  ;;  %v676_v5 = vshrl.u32 %v1816_v50, 16 }
  0x4d   : > { %793 = vrot.lane.b32.xlu1 %v774_v53, %s2091_s4  ;;  %v913_v21 = vor.u32 %v912_v8, %v908_v7  ;;  %v441_v43 = vsel %vm369_vm1, %v436_v18, %v440_v31  ;;  %v688_v53 = vshrl.u32 %v1817_v33, 16  ;;  %v683_v7 = vshll.u32 %v2016_v62, 16  ;;  %v213_v8 = vld [vmem:[%s2152_s25 + $0x48] sm:$0xf] }
  0x4e   : > { %v680_v52 = vrot.slane %v678_v61, 1  ;;  %v946_v12 = vshll.u32 %v1841_v63, 16  ;;  %v2403_v20 = vcombine.low %v213_v8, %v2390_v9  ;;  %v944_v29 = vshrl.u32 %v1841_v63, 16  ;;  %v2417_v31 = vld [vmem:[%s2152_s25 + $0x50] ss:$0 sps:$4 sm:$0x11]  }
  0x4f   : > { %727 = vrot.lane.b32.xlu0 %v662_v57, %s2090_s3  ;;  %v918_v36 = vsel %vm369_vm1, %v913_v21, %v917_v23  ;;  %v2043_v21 = vld [vmem:[%s2947_s1 + $0x10] ss:$0 sps:$4 sm:$0x33]   ;;  %v1832_v23 = vcombine.low %v1750_v1, %v2361_v40  ;;  %v685_v26 = vrot.slane %v683_v7, 1  ;;  %v951_v18 = vshll.u32 %v2398_v13, 16 }
  0x50   : > { %v681_v25 = vor.u32 %v680_v52, %v676_v5  ;;  %1917 = vmatprep.subr.msk.bf16.mxu0 %vm1232_vm2, %v2043_v21  ;;  %1918 = vmatprep.subr.msk.bf16.mxu1 %vm1232_vm2, %v2043_v21  ;;  %v1736_v5 = vld [vmem:[%s2152_s25 + $0x60] sm:$0xf]  ;;  %v1811_v52 = vcombine.low %v232_v0, %v2412_v28  ;;  %v529_v28 = vrot.slane %v2026_v49, 1  ;;  %v2039_v0 = vld [vmem:[%s2152_s25 + $0x74] ss:$0 sps:$4 sm:$0x11]  }
  0x51   : > { %849 = vrot.lane.b32.xlu1 %v1839_v24, %s2092_s7  ;;  %v1783_v24 = vld [vmem:[%s2152_s25 + $0x3c] sm:$0xe]  ;;  %v775_v40 = vrot.slane %v1832_v23, 1  ;;  %v1734_v23 = vld [vmem:[%s2152_s25 + $0x54] sm:$0xf] }
  0x52   : > { %v1855_v34 = vcombine.low %v1783_v24, %v2289_v2  ;;  %v690_v2 = vshll.u32 %v1817_v33, 16  ;;  %v686_v39 = vsel %vm369_vm1, %v681_v25, %v685_v26  ;;  %v1735_v25 = vld [vmem:[%s2152_s25 + $0x58] sm:$0xf]  ;;  %v528_v27 = vrot.slane %v1811_v52, 1 }
  0x53   : > { %791 = vrot.lane.b32.xlu0 %v771_v6, %s2091_s4  ;;  %v521_v6 = vsel %vm506_vm0, %v519_v35, %v520_v60  ;;  %v455_v60 = vshrl.u32 %v2425_v38, 16 }
  0x54   : > { %v1028_v47 = vrot.slane %v1855_v34, 1  ;;  %v692_v57 = vrot.slane %v690_v2, 1  ;;  %v953_v2 = vrot.slane %v951_v18, 1 }
  0x55   : > { %985 = vrot.lane.b32.xlu1 %v930_v11, %s2093_s8  ;;  %v2394_v11 = vld [vmem:[%s2152_s25 + $0x4c] sm:$0xf] }
  0x56   : > { %v1030_v37 = vsel %vm506_vm0, %v1028_v47, %v1029_v48  ;;  %v693_v3 = vor.u32 %v692_v57, %v688_v53  ;;  %v1840_v24 = vcombine.low %v1764_v10, %v2394_v11  ;;  %v443_v47 = vshrl.u32 %v2403_v20, 16 }
  0x57   : > { %847 = vrot.lane.b32.xlu0 %v1838_v46, %s2092_s7  ;;  %v2015_v46 = vld [vmem:[%s2152_s25 + $0x50] ss:$0 sps:$4 sm:$0x11]   ;;  %v939_v57 = vshll.u32 %v2022_v44, 16 }
  0x58   : > { %v695_v58 = vshll.u32 %v2015_v46, 16  ;;  %v779_v19 = vrot.slane %v2015_v46, 1  ;;  %v450_v46 = vshll.u32 %v2417_v31, 16  ;;  %v932_v53 = vshrl.u32 %v1840_v24, 16 }
  0x59   : > { %474 = vrot.lane.b32.xlu1 %v429_v30, %s2089_s28  ;;  %v948_v30 = vrot.slane %v946_v12, 1  ;;  %v231_v12 = vld [vmem:[%s2152_s25 + $0x48] sm:$0xe] }
  0x5a   : > { %v697_v4 = vrot.slane %v695_v58, 1  ;;  %v780_v34 = vsel %vm506_vm0, %v778_v16, %v779_v19  ;;  %v1784_v58 = vld [vmem:[%s2152_s25 + $0x48] sm:$0xe]  ;;  %v1810_v26 = vcombine.low %v231_v12, %v2390_v9 }
  0x5b   : > { %983 = vrot.lane.b32.xlu0 %v918_v36, %s2093_s8  ;;  %v445_v36 = vshll.u32 %v2403_v20, 16  ;;  %v949_v45 = vor.u32 %v948_v30, %v944_v29  ;;  %v1856_v1 = vcombine.low %v1784_v58, %v2394_v11  ;;  %v1752_v58 = vld [vmem:[%s2152_s25 + $0x54] sm:$0xe] }
  0x5c   : > { %v698_v14 = vsel %vm369_vm1, %v693_v3, %v697_v4  ;;  %v941_v4 = vrot.slane %v939_v57, 1  ;;  %v525_v9 = vrot.slane %v1810_v26, 1 }
  0x5d   : > { %476 = vrot.lane.b32.xlu1 %v441_v43, %s2089_s28  ;;  %v934_v43 = vshll.u32 %v1840_v24, 16  ;;  %v447_v48 = vrot.slane %v445_v36, 1  ;;  %v954_v59 = vsel %vm369_vm1, %v949_v45, %v953_v2  ;;  %v1031_v19 = vrot.slane %v1856_v1, 1  ;;  %v1770_v45 = vld [vmem:[%s2152_s25 + $0x6c] sm:$0xf] }
  0x5e   : > { %v526_v36 = vrot.slane %v2417_v31, 1  ;;  %v1834_v1 = vcombine.low %v1752_v58, %v1735_v25 }
  0x5f   : > { %1047 = vrot.lane.b32.xlu0 %v1027_v41, %s2094_s10  ;;  %v776_v41 = vrot.slane %v2016_v62, 1  ;;  %v448_v35 = vor.u32 %v447_v48, %v443_v47  ;;  %v462_v62 = vshll.u32 %v2026_v49, 16  ;;  %v1771_v47 = vld [vmem:[%s2152_s25 + $0x70] sm:$0xf] }
  0x60   : > { %v781_v12 = vrot.slane %v1834_v1, 1 }
  0x61   : > { %541 = vrot.lane.b32.xlu1 %v524_v55, %s2088_s27  ;;  %v777_v51 = vsel %vm506_vm0, %v775_v40, %v776_v41  ;;  %v936_v55 = vrot.slane %v934_v43, 1  ;;  %v464_v10 = vrot.slane %v462_v62, 1  ;;  %v530_v40 = vsel %vm506_vm0, %v528_v27, %v529_v28 }
  0x63   : > { %1049 = vrot.lane.b32.xlu0 %v1030_v37, %s2094_s10  ;;  %v452_v37 = vrot.slane %v450_v46, 1  ;;  %v937_v3 = vor.u32 %v936_v55, %v932_v53  ;;  %v2034_v46 = vld [vmem:[%s2152_s25 + $0x5c] ss:$0 sps:$4 sm:$0x11]  }
  0x64   : > { %v707_v57 = vshll.u32 %v2034_v46, 16 }
  0x65   : > { %597 = vrot.lane.b32.xlu1 %v1817_v33, %s2087_s26  ;;  %v1234_v33 = vsel %vm1232_vm2, %v2043_v21, 0  ;;  %v453_v7 = vsel %vm369_vm1, %v448_v35, %v452_v37  ;;  %v942_v16 = vsel %vm369_vm1, %v937_v3, %v941_v4  ;;  %v1032_v21 = vrot.slane %v2022_v44, 1  ;;  %v1769_v37 = vld [vmem:[%s2152_s25 + $0x64] sm:$0xf] }
  0x66   : > { %1894 = vmatpush3.bf16.msra.mxu0 %v1234_v33  ;;  %1916 = vmatpush3.bf16.msra.mxu1 %v1234_v33  ;;  %v1035_v33 = vrot.slane %v2398_v13, 1  ;;  %v709_v4 = vrot.slane %v707_v57, 1 }
  0x67   : > { %539 = vrot.lane.b32.xlu0 %v521_v6, %s2088_s27  ;;  %v1785_v6 = vld [vmem:[%s2152_s25 + $0x54] sm:$0xe]  ;;  %v1033_v30 = vsel %vm506_vm0, %v1031_v19, %v1032_v21 }
  0x69   : > { %733 = vrot.lane.b32.xlu1 %v698_v14, %s2090_s3  ;;  %v1857_v14 = vcombine.low %v1785_v6, %v2377_v54  ;;  %v2033_v54 = vld [vmem:[%s2152_s25 + $0x68] ss:$0 sps:$4 sm:$0x11]   ;;  %v1787_v6 = vld [vmem:[%s2152_s25 + $0x6c] sm:$0xe] }
  0x6a   : > { %v719_v44 = vshll.u32 %v2033_v54, 16  ;;  %v1859_v21 = vcombine.low %v1787_v6, %v1771_v47 }
  0x6b   : > { %595 = vrot.lane.b32.xlu0 %v1816_v50, %s2087_s26  ;;  %v457_v50 = vshll.u32 %v2425_v38, 16  ;;  %v1034_v18 = vrot.slane %v1857_v14, 1 }
  0x6c   : > { %v721_v49 = vrot.slane %v719_v44, 1 }
  0x6d   : > { %797 = vrot.lane.b32.xlu1 %v780_v34, %s2091_s4  ;;  %v459_v61 = vrot.slane %v457_v50, 1  ;;  %v1818_v34 = vcombine.low %v1734_v23, %v1735_v25  ;;  %v1036_v2 = vsel %vm506_vm0, %v1034_v18, %v1035_v33  ;;  %v1843_v50 = vcombine.low %v1770_v45, %v1771_v47 }
  0x6e   : > { %v1040_v18 = vrot.slane %v1859_v21, 1  ;;  %v1041_v33 = vrot.slane %v2039_v0, 1 }
  0x6f   : > { %731 = vrot.lane.b32.xlu0 %v686_v39, %s2090_s3  ;;  %v460_v8 = vor.u32 %v459_v61, %v455_v60  ;;  %v1753_v39 = vld [vmem:[%s2152_s25 + $0x60] sm:$0xe]  ;;  %v702_v13 = vshll.u32 %v1818_v34, 16  ;;  %v700_v53 = vshrl.u32 %v1818_v34, 16  ;;  %v785_v61 = vrot.slane %v2033_v54, 1 }
  0x70   : > { %v970_v62 = vshll.u32 %v1843_v50, 16  ;;  %v968_v52 = vshrl.u32 %v1843_v50, 16 }
  0x71   : > { %853 = vrot.lane.b32.xlu1 %v1841_v63, %s2092_s7  ;;  %v1737_v63 = vld [vmem:[%s2152_s25 + $0x64] sm:$0xf]  ;;  %v704_v55 = vrot.slane %v702_v13, 1 }
  0x72   : > { %v1819_v11 = vcombine.low %v1736_v5, %v1737_v63  ;;  %v1835_v31 = vcombine.low %v1753_v39, %v1737_v63 }
  0x73   : > { %795 = vrot.lane.b32.xlu0 %v777_v51, %s2091_s4  ;;  %v527_v51 = vsel %vm506_vm0, %v525_v9, %v526_v36  ;;  %v705_v3 = vor.u32 %v704_v55, %v700_v53 }
  0x74   : > { %v714_v29 = vshll.u32 %v1819_v11, 16  ;;  %v712_v41 = vshrl.u32 %v1819_v11, 16  ;;  %v784_v60 = vrot.slane %v1835_v31, 1 }
  0x75   : > { %989 = vrot.lane.b32.xlu1 %v954_v59, %s2093_s8  ;;  %v1768_v59 = vld [vmem:[%s2152_s25 + $0x60] sm:$0xf] }
  0x76   : > { %v716_v43 = vrot.slane %v714_v29, 1  ;;  %v1842_v5 = vcombine.low %v1768_v59, %v1769_v37  ;;  %v786_v63 = vsel %vm506_vm0, %v784_v60, %v785_v61  ;;  %v1786_v29 = vld [vmem:[%s2152_s25 + $0x60] sm:$0xe] }
  0x77   : > { %851 = vrot.lane.b32.xlu0 %v1840_v24, %s2092_s7  ;;  %v465_v24 = vsel %vm369_vm1, %v460_v8, %v464_v10  ;;  %v975_v8 = vshll.u32 %v2039_v0, 16  ;;  %v710_v10 = vsel %vm369_vm1, %v705_v3, %v709_v4  ;;  %v1858_v9 = vcombine.low %v1786_v29, %v1769_v37 }
  0x78   : > { %v717_v48 = vor.u32 %v716_v43, %v712_v41  ;;  %v958_v14 = vshll.u32 %v1842_v5, 16 }
  0x79   : > { %478 = vrot.lane.b32.xlu1 %v453_v7, %s2089_s28  ;;  %v972_v7 = vrot.slane %v970_v62, 1  ;;  %v977_v25 = vrot.slane %v975_v8, 1  ;;  %v1037_v44 = vrot.slane %v1858_v9, 1 }
  0x7a   : > { %v722_v35 = vsel %vm369_vm1, %v717_v48, %v721_v49  ;;  %v960_v27 = vrot.slane %v958_v14, 1 }
  0x7b   : > { %987 = vrot.lane.b32.xlu0 %v942_v16, %s2093_s8  ;;  %v2040_v16 = vld [vmem:[%s2152_s25 + $0x68] ss:$0 sps:$4 sm:$0x11]   ;;  %v973_v23 = vor.u32 %v972_v7, %v968_v52 }
  0x7c   : > { %v963_v28 = vshll.u32 %v2040_v16, 16  ;;  %v1038_v45 = vrot.slane %v2040_v16, 1 }
  0x7d   : > { %480 = vrot.lane.b32.xlu1 %v465_v24, %s2089_s28  ;;  %v956_v24 = vshrl.u32 %v1842_v5, 16 }
  0x7e   : > { %v965_v39 = vrot.slane %v963_v28, 1 }
  0x7f   : > { %1051 = vrot.lane.b32.xlu0 %v1033_v30, %s2094_s10  ;;  %v978_v30 = vsel %vm369_vm1, %v973_v23, %v977_v25  ;;  %v961_v36 = vor.u32 %v960_v27, %v956_v24 }
  0x81   : > { %545 = vrot.lane.b32.xlu1 %v530_v40, %s2088_s27  ;;  %v1042_v40 = vsel %vm506_vm0, %v1040_v18, %v1041_v33  ;;  %v966_v43 = vsel %vm369_vm1, %v961_v36, %v965_v39 }
  0x83   : > { %1053 = vrot.lane.b32.xlu0 %v1036_v2, %s2094_s10 }
  0x85   : > { %601 = vrot.lane.b32.xlu1 %v1819_v11, %s2087_s26  ;;  %v782_v11 = vrot.slane %v2034_v46, 1  ;;  %v1039_v46 = vsel %vm506_vm0, %v1037_v44, %v1038_v45 }
  0x87   : > { %543 = vrot.lane.b32.xlu0 %v527_v51, %s2088_s27  ;;  %v783_v26 = vsel %vm506_vm0, %v781_v12, %v782_v11 }
  0x89   : > { %737 = vrot.lane.b32.xlu1 %v722_v35, %s2090_s3 }
  0x8b   : > { %599 = vrot.lane.b32.xlu0 %v1818_v34, %s2087_s26 }
  0x8d   : > { %801 = vrot.lane.b32.xlu1 %v786_v63, %s2091_s4 }
  0x8f   : > { %735 = vrot.lane.b32.xlu0 %v710_v10, %s2090_s3  ;;  %v590_v19 = vpop.permute.xlu1 %589 }
  0x90   : > { %v588_v54 = vpop.permute.xlu0 %587 }
  0x91   : > { %857 = vrot.lane.b32.xlu1 %v1843_v50, %s2092_s7 }
  0x93   : > { %799 = vrot.lane.b32.xlu0 %v783_v26, %s2091_s4  ;;  %v532_v34 = vpop.permute.xlu1 %531 }
  0x95   : > { %993 = vrot.lane.b32.xlu1 %v978_v30, %s2093_s8 }
  0x97   : > { %855 = vrot.lane.b32.xlu0 %v1842_v5, %s2092_s7  ;;  %v534_v41 = vpop.permute.xlu1 %533 }
  0x99   : > { %v467_v2 = vpop.permute.xlu0 %466  ;;  %1057 = vrot.lane.b32.xlu1 %v1042_v40, %s2094_s10 }
  0x9a   : > { %v1061_v51 = vsel %vm1059_vm3, %v2171_v15, %v467_v2 }
  0x9b   : > { %991 = vrot.lane.b32.xlu0 %v966_v43, %s2093_s8  ;;  %v726_v13 = vpop.permute.xlu1 %725  ;;  %v1078_v58 = vsel %vm1076_vm4, %v1061_v51, %v532_v34 }
  0x9c   : > { %v1095_v60 = vsel %vm1093_vm5, %v1078_v58, %v588_v54 }
  0x9d   : > { %v469_v47 = vpop.permute.xlu0 %468 }
  0x9e   : > { %v1063_v53 = vsel %vm1059_vm3, %v2175_v22, %v469_v47 }
  0x9f   : > { %1055 = vrot.lane.b32.xlu0 %v1039_v46, %s2094_s10  ;;  %v790_v31 = vpop.permute.xlu1 %789  ;;  %v1080_v59 = vsel %vm1076_vm4, %v1063_v53, %v534_v41 }
  0xa0   : > { %v1097_v35 = vsel %vm1093_vm5, %v1080_v59, %v590_v19 }
  0xa1   : > { %v724_v48 = vpop.permute.xlu0 %723  ;;  %v1114_v22 = vsel %vm1110_vm6, %v1097_v35, %v726_v13 }
  0xa2   : > { %v1112_v62 = vsel %vm1110_vm6, %v1095_v60, %v724_v48  ;;  %v1131_v63 = vsel %vm1127_vm7, %v1114_v22, %v790_v31 }
  0xa3   : > { %v846_v49 = vpop.permute.xlu1 %845 }
  0xa4   : > { %v1148_v6 = vsel %vm1144_vm8, %v1131_v63, %v846_v49 }
  0xa5   : > { %v788_v50 = vpop.permute.xlu0 %787 }
  0xa6   : > { %v1129_v15 = vsel %vm1127_vm7, %v1112_v62, %v788_v50 }
  0xa7   : > { %v982_v55 = vpop.permute.xlu1 %981 }
  0xa8   : > { %v1165_v7 = vsel %vm1161_vm10, %v1148_v6, %v982_v55 }
  0xa9   : > { %v844_v57 = vpop.permute.xlu0 %843 }
  0xaa   : > { %v1146_v0 = vsel %vm1144_vm8, %v1129_v15, %v844_v57 }
  0xab   : > { %v471_v37 = vpop.permute.xlu1 %470 }
  0xac   : > { %v1065_v27 = vsel %vm1059_vm3, %v2228_v17, %v471_v37 }
  0xad   : > { %v980_v61 = vpop.permute.xlu0 %979 }
  0xae   : > { %v1163_v3 = vsel %vm1161_vm10, %v1146_v0, %v980_v61 }
  0xaf   : > { %v473_v1 = vpop.permute.xlu1 %472 }
  0xb0   : > { %v1067_v54 = vsel %vm1059_vm3, %v2246_v32, %v473_v1 }
  0xb1   : > { %v1044_v4 = vpop.permute.xlu0 %1043 }
  0xb2   : > { %v1180_v5 = vsel %vm1178_vm9, %v1163_v3, %v1044_v4 }
  0xb3   : > { %1895 = vmatprep.mubr.msk.bf16.mxu0 %vm1215_vm11, %v1180_v5  ;;  %v538_v52 = vpop.permute.xlu1 %537 }
  0xb4   : > { %v1084_v9 = vsel %vm1076_vm4, %v1067_v54, %v538_v52 }
  0xb5   : > { %v1046_v8 = vpop.permute.xlu0 %1045 }
  0xb6   : > { %v1182_v10 = vsel %vm1178_vm9, %v1165_v7, %v1046_v8 }
  0xb7   : > { %1896 = vmatmul.mubr.msk.bf16.vlgmr.msra.gmra.mrb[0].mxu0 %vm1215_vm11, %v1182_v10  ;;  %v594_v12 = vpop.permute.xlu1 %593 }
  0xb8   : > { %v1101_v17 = vsel %vm1093_vm5, %v1084_v9, %v594_v12 }
  0xb9   : > { %v536_v11 = vpop.permute.xlu0 %535 }
  0xba   : > { %v1082_v28 = vsel %vm1076_vm4, %v1065_v27, %v536_v11 }
  0xbb   : > { %v730_v14 = vpop.permute.xlu1 %729 }
  0xbc   : > { %v1118_v43 = vsel %vm1110_vm6, %v1101_v17, %v730_v14 }
  0xbd   : > { %v592_v16 = vpop.permute.xlu0 %591 }
  0xbe   : > { %v1099_v30 = vsel %vm1093_vm5, %v1082_v28, %v592_v16 }
  0xbf   : > { %v794_v19 = vpop.permute.xlu1 %793 }
  0xc0   : > { %v1135_v44 = vsel %vm1127_vm7, %v1118_v43, %v794_v19 }
  0xc1   : > { %v728_v21 = vpop.permute.xlu0 %727 }
  0xc2   : > { %v1116_v33 = vsel %vm1110_vm6, %v1099_v30, %v728_v21 }
  0xc3   : > { %v850_v23 = vpop.permute.xlu1 %849 }
  0xc4   : > { %v1152_v45 = vsel %vm1144_vm8, %v1135_v44, %v850_v23 }
  0xc5   : > { %v792_v25 = vpop.permute.xlu0 %791 }
  0xc6   : > { %v1133_v34 = vsel %vm1127_vm7, %v1116_v33, %v792_v25 }
  0xc7   : > { %v986_v26 = vpop.permute.xlu1 %985 }
  0xc8   : > { %v1169_v13 = vsel %vm1161_vm10, %v1152_v45, %v986_v26 }
  0xc9   : > { %v848_v24 = vpop.permute.xlu0 %847 }
  0xca   : > { %v1150_v36 = vsel %vm1144_vm8, %v1133_v34, %v848_v24 }
  0xcb   : > { %v475_v29 = vpop.permute.xlu1 %474 }
  0xcc   : > { %v1069_v37 = vsel %vm1059_vm3, %v2313_v42, %v475_v29 }
  0xcd   : > { %v984_v18 = vpop.permute.xlu0 %983 }
  0xce   : > { %v1167_v40 = vsel %vm1161_vm10, %v1150_v36, %v984_v18 }
  0xcf   : > { %v477_v39 = vpop.permute.xlu1 %476 }
  0xd0   : > { %v1071_v61 = vsel %vm1059_vm3, %v2329_v56, %v477_v39 }
  0xd1   : > { %v1048_v41 = vpop.permute.xlu0 %1047 }
  0xd2   : > { %v1184_v32 = vsel %vm1178_vm9, %v1167_v40, %v1048_v41 }
  0xd3   : > { %1899 = vmatprep.mubr.msk.bf16.mxu0 %vm1215_vm11, %v1184_v32  ;;  %v542_v2 = vpop.permute.xlu1 %541 }
  0xd4   : > { %v1088_v1 = vsel %vm1076_vm4, %v1071_v61, %v542_v2 }
  0xd5   : > { %v1050_v46 = vpop.permute.xlu0 %1049 }
  0xd6   : > { %v1186_v47 = vsel %vm1178_vm9, %v1169_v13, %v1050_v46 }
  0xd7   : > { %1900 = vmatmul.mubr.msk.bf16.gmra.mrb[4].mxu0 %vm1215_vm11, %v1186_v47  ;;  %v598_v31 = vpop.permute.xlu1 %597 }
  0xd8   : > { %v1105_v42 = vsel %vm1093_vm5, %v1088_v1, %v598_v31 }
  0xd9   : > { %v540_v48 = vpop.permute.xlu0 %539 }
  0xda   : > { %v1086_v35 = vsel %vm1076_vm4, %v1069_v37, %v540_v48 }
  0xdb   : > { %v734_v49 = vpop.permute.xlu1 %733 }
  0xdc   : > { %v1122_v6 = vsel %vm1110_vm6, %v1105_v42, %v734_v49 }
  0xdd   : > { %v596_v50 = vpop.permute.xlu0 %595 }
  0xde   : > { %v1103_v62 = vsel %vm1093_vm5, %v1086_v35, %v596_v50 }
  0xdf   : > { %v798_v51 = vpop.permute.xlu1 %797 }
  0xe0   : > { %v1139_v52 = vsel %vm1127_vm7, %v1122_v6, %v798_v51 }
  0xe1   : > { %v732_v53 = vpop.permute.xlu0 %731 }
  0xe2   : > { %v1120_v22 = vsel %vm1110_vm6, %v1103_v62, %v732_v53 }
  0xe3   : > { %v854_v55 = vpop.permute.xlu1 %853 }
  0xe4   : > { %v1156_v7 = vsel %vm1144_vm8, %v1139_v52, %v854_v55 }
  0xe5   : > { %v796_v57 = vpop.permute.xlu0 %795 }
  0xe6   : > { %v1137_v0 = vsel %vm1127_vm7, %v1120_v22, %v796_v57 }
  0xe7   : > { %v990_v58 = vpop.permute.xlu1 %989 }
  0xe8   : > { %v1173_v10 = vsel %vm1161_vm10, %v1156_v7, %v990_v58 }
  0xe9   : > { %v852_v59 = vpop.permute.xlu0 %851 }
  0xea   : > { %v1154_v3 = vsel %vm1144_vm8, %v1137_v0, %v852_v59 }
  0xeb   : > { %v479_v60 = vpop.permute.xlu1 %478 }
  0xec   : > { %v1073_v54 = vsel %vm1059_vm3, %v2403_v20, %v479_v60 }
  0xed   : > { %v988_v15 = vpop.permute.xlu0 %987 }
  0xee   : > { %v1171_v5 = vsel %vm1161_vm10, %v1154_v3, %v988_v15 }
  0xef   : > { %v481_v4 = vpop.permute.xlu1 %480 }
  0xf0   : > { %v1075_v28 = vsel %vm1059_vm3, %v2425_v38, %v481_v4 }
  0xf1   : > { %v1052_v63 = vpop.permute.xlu0 %1051 }
  0xf2   : > { %v1188_v56 = vsel %vm1178_vm9, %v1171_v5, %v1052_v63 }
  0xf3   : > { %1903 = vmatprep.mubr.msk.bf16.mxu1 %vm1215_vm11, %v1188_v56  ;;  %v546_v8 = vpop.permute.xlu1 %545 }
  0xf4   : > { %v1092_v18 = vsel %vm1076_vm4, %v1075_v28, %v546_v8 }
  0xf5   : > { %v1054_v12 = vpop.permute.xlu0 %1053 }
  0xf6   : > { %v1190_v11 = vsel %vm1178_vm9, %v1173_v10, %v1054_v12 }
  0xf7   : > { %1904 = vmatmul.mubr.msk.bf16.vlgmr.msra.gmra.mrb[0].mxu1 %vm1215_vm11, %v1190_v11  ;;  %v602_v14 = vpop.permute.xlu1 %601 }
  0xf8   : > { %v1109_v9 = vsel %vm1093_vm5, %v1092_v18, %v602_v14 }
  0xf9   : > { %v544_v16 = vpop.permute.xlu0 %543 }
  0xfa   : > { %v1090_v30 = vsel %vm1076_vm4, %v1073_v54, %v544_v16 }
  0xfb   : > { %v738_v19 = vpop.permute.xlu1 %737 }
  0xfc   : > { %v1126_v39 = vsel %vm1110_vm6, %v1109_v9, %v738_v19 }
  0xfd   : > { %v600_v21 = vpop.permute.xlu0 %599 }
  0xfe   : > { %v1107_v33 = vsel %vm1093_vm5, %v1090_v30, %v600_v21 }
  0xff   : > { %v802_v23 = vpop.permute.xlu1 %801 }
 0x100   : > { %v1143_v17 = vsel %vm1127_vm7, %v1126_v39, %v802_v23 }
 0x101   : > { %v736_v25 = vpop.permute.xlu0 %735 }
 0x102   : > { %v1124_v36 = vsel %vm1110_vm6, %v1107_v33, %v736_v25 }
 0x103   : > { %v858_v26 = vpop.permute.xlu1 %857 }
 0x104   : > { %v1160_v41 = vsel %vm1144_vm8, %v1143_v17, %v858_v26 }
 0x105   : > { %v800_v24 = vpop.permute.xlu0 %799 }
 0x106   : > { %v1141_v38 = vsel %vm1127_vm7, %v1124_v36, %v800_v24 }
 0x107   : > { %v994_v29 = vpop.permute.xlu1 %993 }
 0x108   : > { %v1177_v44 = vsel %vm1161_vm10, %v1160_v41, %v994_v29 }
 0x109   : > { %v856_v27 = vpop.permute.xlu0 %855 }
 0x10a   : > { %v1158_v20 = vsel %vm1144_vm8, %v1141_v38, %v856_v27 }
 0x10b   : > { %v1058_v40 = vpop.permute.xlu1 %1057 }
 0x10c   : > { %v1194_v2 = vsel %vm1178_vm9, %v1177_v44, %v1058_v40 }
 0x10d   : > { %v992_v34 = vpop.permute.xlu0 %991 }
 0x10e   : > { %v1175_v43 = vsel %vm1161_vm10, %v1158_v20, %v992_v34 }
 0x111   : > { %v1056_v32 = vpop.permute.xlu0 %1055 }
 0x112   : > { %v1192_v45 = vsel %vm1178_vm9, %v1175_v43, %v1056_v32 }
 0x113   : > { %1907 = vmatprep.mubr.msk.bf16.mxu1 %vm1215_vm11, %v1192_v45 }
 0x114   : > { %1908 = vmatmul.mubr.msk.bf16.gmra.mrb[4].mxu1 %vm1215_vm11, %v1194_v2 }
 0x18a   : > { %v1897_v13 = vpop.f32.mrb[0].mxu0 }
 0x18b   : > { %1401 = vst.msk [vmem:[%s2585_s19 + $0x10] sm:$0xff] %vm1076_vm4, %v1897_v13  ;;  %v1270_v46 = vpop.f32.mrb[1].mxu0  ;;  %v1360_v51 = vmul.f32 %v1897_v13, %v1897_v13 }
 0x18c   : > { %1399 = vst.msk [vmem:[%s2585_s19] sm:$0xff] %vm1076_vm4, %v1270_v46  ;;  %v1898_v47 = vpop.f32.mrb[2].mxu0  ;;  %v1358_v48 = vmul.f32 %v1270_v46, %v1270_v46 }
 0x18d   : > { %1402 = vst.msk [vmem:[%s2585_s19 + $0x18] sm:$0xff] %vm1076_vm4, %v1898_v47  ;;  %v1273_v31 = vpop.f32.mrb[3].mxu0  ;;  %v1361_v57 = vmul.f32 %v1898_v47, %v1898_v47 }
 0x18e   : > { %v1334_v49 = vadd.f32 %v1273_v31, %v1270_v46  ;;  %v1359_v50 = vmul.f32 %v1273_v31, %v1273_v31  ;;  %1400 = vst.msk [vmem:[%s2585_s19 + $0x8] sm:$0xff] %vm1076_vm4, %v1273_v31 }
 0x190   : > { %v1335_v53 = vadd.f32 %v1897_v13, %v1334_v49  ;;  %v1374_v55 = vadd.f32 %v1359_v50, %v1358_v48 }
 0x192   : > { %v1375_v58 = vadd.f32 %v1374_v55, %v1360_v51  ;;  %v1336_v59 = vadd.f32 %v1898_v47, %v1335_v53  ;;  %v1333_v51 = vld [vmem:[#allocation2] sm:$0x1] }
 0x194   : > { %v1376_v37 = vadd.f32 %v1375_v58, %v1361_v57  ;;  %v1357_v57 = vld [vmem:[#allocation2 + $0x1] sm:$0x1] }
 0x1aa   : > { %v1901_v35 = vpop.f32.mrb[4].mxu0 }
 0x1ab   : > { %1405 = vst.msk [vmem:[%s2585_s19 + $0x30] sm:$0xff] %vm1076_vm4, %v1901_v35  ;;  %v1286_v60 = vpop.f32.mrb[5].mxu0  ;;  %v1364_v4 = vmul.f32 %v1901_v35, %v1901_v35 }
 0x1ac   : > { %v1337_v61 = vadd.f32 %v1336_v59, %v1286_v60  ;;  %v1362_v62 = vmul.f32 %v1286_v60, %v1286_v60  ;;  %1403 = vst.msk [vmem:[%s2585_s19 + $0x20] sm:$0xff] %vm1076_vm4, %v1286_v60  ;;  %v1902_v15 = vpop.f32.mrb[6].mxu0 }
 0x1ad   : > { %1406 = vst.msk [vmem:[%s2585_s19 + $0x38] sm:$0xff] %vm1076_vm4, %v1902_v15  ;;  %v1289_v22 = vpop.f32.mrb[7].mxu0  ;;  %v1365_v63 = vmul.f32 %v1902_v15, %v1902_v15 }
 0x1ae   : > { %v1377_v0 = vadd.f32 %v1376_v37, %v1362_v62  ;;  %v1338_v1 = vadd.f32 %v1337_v61, %v1289_v22  ;;  %v1363_v3 = vmul.f32 %v1289_v22, %v1289_v22  ;;  %1404 = vst.msk [vmem:[%s2585_s19 + $0x28] sm:$0xff] %vm1076_vm4, %v1289_v22  ;;  %v1460_v61 = vlaneseq (!%p1872_p7) }
 0x1b0   : > { %v1339_v42 = vadd.f32 %v1901_v35, %v1338_v1  ;;  %v1378_v5 = vadd.f32 %v1377_v0, %v1363_v3  ;;  %v2620_v0 = vshrl.u32 (!%p1872_p7), %v1460_v61, 7 }
 0x1b2   : > { %v1379_v6 = vadd.f32 %v1378_v5, %v1364_v4  ;;  %v1340_v56 = vadd.f32 %v1902_v15, %v1339_v42  ;;  %v1462_v4 = vsub.s32 (!%p1872_p7), 0, %v2620_v0 }
 0x1b4   : > { %v1380_v52 = vadd.f32 %v1379_v6, %v1365_v63 }
 0x1ca   : > { %v1905_v7 = vpop.f32.mrb[0].mxu1 }
 0x1cb   : > { %1409 = vst.msk [vmem:[%s2585_s19 + $0x50] sm:$0xff] %vm1076_vm4, %v1905_v7  ;;  %v1302_v8 = vpop.f32.mrb[1].mxu1  ;;  %v1368_v23 = vmul.f32 %v1905_v7, %v1905_v7 }
 0x1cc   : > { %v1341_v10 = vadd.f32 %v1340_v56, %v1302_v8  ;;  %v1366_v12 = vmul.f32 %v1302_v8, %v1302_v8  ;;  %1407 = vst.msk [vmem:[%s2585_s19 + $0x40] sm:$0xff] %vm1076_vm4, %v1302_v8  ;;  %v1906_v11 = vpop.f32.mrb[2].mxu1 }
 0x1cd   : > { %1410 = vst.msk [vmem:[%s2585_s19 + $0x58] sm:$0xff] %vm1076_vm4, %v1906_v11  ;;  %v1305_v14 = vpop.f32.mrb[3].mxu1  ;;  %v1369_v24 = vmul.f32 %v1906_v11, %v1906_v11 }
 0x1ce   : > { %v1381_v16 = vadd.f32 %v1380_v52, %v1366_v12  ;;  %v1342_v19 = vadd.f32 %v1341_v10, %v1305_v14  ;;  %v1367_v21 = vmul.f32 %v1305_v14, %v1305_v14  ;;  %1408 = vst.msk [vmem:[%s2585_s19 + $0x48] sm:$0xff] %vm1076_vm4, %v1305_v14 }
 0x1d0   : > { %v1343_v25 = vadd.f32 %v1905_v7, %v1342_v19  ;;  %v1382_v26 = vadd.f32 %v1381_v16, %v1367_v21 }
 0x1d2   : > { %v1383_v27 = vadd.f32 %v1382_v26, %v1368_v23  ;;  %v1344_v28 = vadd.f32 %v1906_v11, %v1343_v25 }
 0x1d4   : > { %v1384_v29 = vadd.f32 %v1383_v27, %v1369_v24 }
 0x1e7   : > { %v1909_v54 = vpop.f32.mrb[4].mxu1 }
 0x1e8   : > { %1413 = vst.msk [vmem:[%s2585_s19 + $0x70] sm:$0xff] %vm1076_vm4, %v1909_v54  ;;  %v1318_v30 = vpop.f32.mrb[5].mxu1  ;;  %v1372_v17 = vmul.f32 %v1909_v54, %v1909_v54 }
 0x1e9   : > { %v1345_v18 = vadd.f32 %v1344_v28, %v1318_v30  ;;  %v1370_v33 = vmul.f32 %v1318_v30, %v1318_v30  ;;  %1411 = vst.msk [vmem:[%s2585_s19 + $0x60] sm:$0xff] %vm1076_vm4, %v1318_v30  ;;  %v1910_v34 = vpop.f32.mrb[6].mxu1 }
 0x1ea   : > { %1414 = vst.msk [vmem:[%s2585_s19 + $0x78] sm:$0xff] %vm1076_vm4, %v1910_v34  ;;  %v1321_v9 = vpop.f32.mrb[7].mxu1  ;;  %v1373_v41 = vmul.f32 %v1910_v34, %v1910_v34 }
 0x1eb   : > { %v1385_v36 = vadd.f32 %v1384_v29, %v1370_v33  ;;  %v1346_v39 = vadd.f32 %v1345_v18, %v1321_v9  ;;  %v1371_v38 = vmul.f32 %v1321_v9, %v1321_v9  ;;  %1412 = vst.msk [vmem:[%s2585_s19 + $0x68] sm:$0xff] %vm1076_vm4, %v1321_v9 }
 0x1ed   : > { %v1347_v20 = vadd.f32 %v1909_v54, %v1346_v39  ;;  %v1386_v40 = vadd.f32 %v1385_v36, %v1371_v38 }
 0x1ef   : > { %v1348_v43 = vadd.f32 %v1910_v34, %v1347_v20  ;;  %v1387_v32 = vadd.f32 %v1386_v40, %v1372_v17 }
 0x1f1   : > { %v1349_v44 = vrot.slane %v1348_v43, 4  ;;  %v1388_v45 = vadd.f32 %v1387_v32, %v1373_v41 }
 0x1f2   : > { %v2624_v5 = vld [vmem:[%s2145_s20] sm:$0xff] (!%p1872_p7)  ;;  %v2629_v6 = vld [vmem:[%s2145_s20 + $0x8] sm:$0xff] (!%p1872_p7)  ;;  %v2632_v56 = vld [vmem:[%s2145_s20 + $0x10] sm:$0xff] (!%p1872_p7) }
 0x1f3   : > { %v1350_v2 = vadd.f32 %v1349_v44, %v1348_v43  ;;  %v1389_v13 = vrot.slane %v1388_v45, 4  ;;  %v2635_v52 = vld [vmem:[%s2145_s20 + $0x18] sm:$0xff] (!%p1872_p7)  ;;  %v2638_v7 = vld [vmem:[%s2145_s20 + $0x20] sm:$0xff] (!%p1872_p7)  ;;  %v2641_v8 = vld [vmem:[%s2145_s20 + $0x28] sm:$0xff] (!%p1872_p7) }
 0x1f4   : > { %v2644_v10 = vld [vmem:[%s2145_s20 + $0x30] sm:$0xff] (!%p1872_p7)  ;;  %v2647_v12 = vld [vmem:[%s2145_s20 + $0x38] sm:$0xff] (!%p1872_p7)  ;;  %v2650_v11 = vld [vmem:[%s2145_s20 + $0x40] sm:$0xff] (!%p1872_p7) }
 0x1f5   : > { %v1351_v46 = vrot.slane %v1350_v2, 2  ;;  %v1390_v47 = vadd.f32 %v1389_v13, %v1388_v45  ;;  %v2653_v14 = vld [vmem:[%s2145_s20 + $0x48] sm:$0xff] (!%p1872_p7)  ;;  %v2656_v16 = vld [vmem:[%s2145_s20 + $0x50] sm:$0xff] (!%p1872_p7)  ;;  %v2659_v19 = vld [vmem:[%s2145_s20 + $0x58] sm:$0xff] (!%p1872_p7) }
 0x1f6   : > { %v2662_v21 = vld [vmem:[%s2145_s20 + $0x60] sm:$0xff] (!%p1872_p7)  ;;  %v2665_v23 = vld [vmem:[%s2145_s20 + $0x68] sm:$0xff] (!%p1872_p7)  ;;  %v2670_v26 = vld [vmem:[%s2145_s20 + $0x70] sm:$0xff] (!%p1872_p7) }
 0x1f7   : > { %v1352_v31 = vadd.f32 %v1351_v46, %v1350_v2  ;;  %v1391_v48 = vrot.slane %v1390_v47, 2  ;;  %v2673_v24 = vld [vmem:[%s2145_s20 + $0x78] sm:$0xff] (!%p1872_p7)  ;;  %v2676_v27 = vld [vmem:[%s2145_s20 + $0x80] sm:$0xff] (!%p1872_p7)  ;;  %v2687_v18 = vld [vmem:[%s2145_s20 + $0x88] sm:$0xff] (!%p1872_p7) }
 0x1f8   : > { %v2690_v33 = vld [vmem:[%s2145_s20 + $0x90] sm:$0xff] (!%p1872_p7)  ;;  %v2693_v34 = vld [vmem:[%s2145_s20 + $0x98] sm:$0xff] (!%p1872_p7)  ;;  %v2704_v17 = vld [vmem:[%s2145_s20 + $0xa0] sm:$0xff] (!%p1872_p7) }
 0x1f9   : > { %v1353_v49 = vrot.slane %v1352_v31, 1  ;;  %v1392_v50 = vadd.f32 %v1391_v48, %v1390_v47  ;;  %v2707_v20 = vld [vmem:[%s2145_s20 + $0xa8] sm:$0xff] (!%p1872_p7)  ;;  %v2710_v40 = vld [vmem:[%s2145_s20 + $0xb0] sm:$0xff] (!%p1872_p7)  ;;  %v2721_v45 = vld [vmem:[%s2145_s20 + $0xb8] sm:$0xff] (!%p1872_p7) }
 0x1fa   : > { %v2724_v2 = vld [vmem:[%s2145_s20 + $0xc0] sm:$0xff] (!%p1872_p7)  ;;  %v2727_v13 = vld [vmem:[%s2145_s20 + $0xc8] sm:$0xff] (!%p1872_p7) }
 0x1fb   : > { %v1354_v53 = vadd.f32 %v1353_v49, %v1352_v31  ;;  %v1393_v55 = vrot.slane %v1392_v50, 1  ;;  %1418 = sbr.rel (%p1872_p7) target bundleno = 563 (0x233), region = 36  ;;  %v2738_v49 = vld [vmem:[%s2145_s20 + $0xd0] sm:$0xff] (!%p1872_p7) }
 0x1fd   : > { %v1355_v58 = vadd.f32 %v1354_v53, %v1333_v51  ;;  %v1394_v59 = vadd.f32 %v1393_v55, %v1392_v50  ;;  %v2741_v50 = vld [vmem:[%s2145_s20 + $0xd8] sm:$0xff] (!%p1872_p7)  ;;  %v2744_v51 = vld [vmem:[%s2145_s20 + $0xe0] sm:$0xff] (!%p1872_p7) }
 0x1ff   : > { %1356 = vst [vmem:[#allocation2] sm:$0x1] %v1355_v58  ;;  %v1395_v37 = vadd.f32 %v1394_v59, %v1357_v57  ;;  %v2755_v59 = vld [vmem:[%s2145_s20 + $0xe8] sm:$0xff] (!%p1872_p7) }
 0x201   : > { %1396 = vst [vmem:[#allocation2 + $0x1] sm:$0x1] %v1395_v37  ;;  %v2758_v37 = vld [vmem:[%s2145_s20 + $0xf0] sm:$0xff] (!%p1872_p7) }
 0x206   : > { %v1419_v35 = vld [vmem:[#allocation2] sm:$0x1] }
 0x207   : > { %v1420_v62 = vmul.f32 0.00390625, %v1419_v35  ;;  %v2761_v35 = vld [vmem:[%s2145_s20 + $0xf8] sm:$0xff] }
 0x208   : > { %v1421_v60 = vld [vmem:[#allocation2 + $0x1] sm:$0x1] }
 0x209   : > { %v1422_v15 = vmul.f32 0.00390625, %v1421_v60  ;;  %v1423_v22 = vmul.f32 %v1420_v62, %v1420_v62  ;;  %v2626_v63 = vrot.slane %v1420_v62, %v1462_v4 }
 0x20b   : > { %v1424_v1 = vsub.f32 %v1422_v15, %v1423_v22  ;;  %v1464_v25 = vsub.f32 %v2624_v5, %v2626_v63  ;;  %v1465_v28 = vsub.f32 %v2629_v6, %v2626_v63  ;;  %v1466_v29 = vsub.f32 %v2632_v56, %v2626_v63 }
 0x20c   : > { %v1467_v54 = vsub.f32 %v2635_v52, %v2626_v63  ;;  %v1468_v30 = vsub.f32 %v2638_v7, %v2626_v63  ;;  %v1469_v9 = vsub.f32 %v2641_v8, %v2626_v63  ;;  %v1470_v36 = vsub.f32 %v2644_v10, %v2626_v63 }
 0x20d   : > { %v1425_v3 = vmax.f32 %v1424_v1, 0.0  ;;  %v1471_v39 = vsub.f32 %v2647_v12, %v2626_v63  ;;  %v1472_v38 = vsub.f32 %v2650_v11, %v2626_v63  ;;  %v1473_v41 = vsub.f32 %v2653_v14, %v2626_v63 }
 0x20e   : > { %v1474_v43 = vsub.f32 %v2656_v16, %v2626_v63  ;;  %v1475_v32 = vsub.f32 %v2659_v19, %v2626_v63  ;;  %v1476_v44 = vsub.f32 %v2662_v21, %v2626_v63  ;;  %v1477_v46 = vsub.f32 %v2665_v23, %v2626_v63 }
 0x20f   : > { %v1426_v42 = vadd.f32 1e-05, %v1425_v3  ;;  %v1478_v47 = vsub.f32 %v2670_v26, %v2626_v63  ;;  %v1479_v31 = vsub.f32 %v2673_v24, %v2626_v63  ;;  %v1480_v48 = vsub.f32 %v2676_v27, %v2626_v63 }
 0x210   : > { %v1481_v53 = vsub.f32 %v2687_v18, %v2626_v63  ;;  %v1482_v55 = vsub.f32 %v2690_v33, %v2626_v63  ;;  %v1483_v57 = vsub.f32 %v2693_v34, %v2626_v63  ;;  %v1484_v58 = vsub.f32 %v2704_v17, %v2626_v63 }
 0x211   : > { %2044 = vrsqrt.f32 %v1426_v42  ;;  %v1485_v61 = vsub.f32 %v2707_v20, %v2626_v63  ;;  %v1486_v62 = vsub.f32 %v2710_v40, %v2626_v63  ;;  %v1487_v15 = vsub.f32 %v2721_v45, %v2626_v63 }
 0x212   : > { %v1488_v22 = vsub.f32 %v2724_v2, %v2626_v63  ;;  %v1489_v1 = vsub.f32 %v2727_v13, %v2626_v63  ;;  %v1490_v3 = vsub.f32 %v2738_v49, %v2626_v63  ;;  %v1491_v42 = vsub.f32 %v2741_v50, %v2626_v63 }
 0x213   : > { %v1492_v5 = vsub.f32 %v2744_v51, %v2626_v63  ;;  %v1493_v6 = vsub.f32 %v2755_v59, %v2626_v63  ;;  %v1494_v56 = vsub.f32 %v2758_v37, %v2626_v63 }
 0x21b   : > { %v2045_v60 = vpop.eup %2044 }
 0x21c   : > { %v2771_v0 = vrot.slane %v2045_v60, %v1462_v4  ;;  %v1495_v4 = vsub.f32 %v2761_v35, %v2626_v63 }
 0x21e   : > { %v1500_v52 = vmul.f32 %v2771_v0, %v1464_v25  ;;  %v1501_v7 = vmul.f32 %v2771_v0, %v1465_v28  ;;  %v1502_v8 = vmul.f32 %v2771_v0, %v1466_v29  ;;  %v1503_v10 = vmul.f32 %v2771_v0, %v1467_v54 }
 0x21f   : > { %v1504_v12 = vmul.f32 %v2771_v0, %v1468_v30  ;;  %v1505_v11 = vmul.f32 %v2771_v0, %v1469_v9  ;;  %v1506_v14 = vmul.f32 %v2771_v0, %v1470_v36  ;;  %v1507_v16 = vmul.f32 %v2771_v0, %v1471_v39 }
 0x220   : > { %v1532_v19 = vmax.f32 %v1500_v52, 0.0  ;;  %v1533_v21 = vmax.f32 %v1501_v7, 0.0  ;;  %v1534_v23 = vmax.f32 %v1502_v8, 0.0  ;;  %v1535_v25 = vmax.f32 %v1503_v10, 0.0 }
 0x221   : > { %v1536_v26 = vmax.f32 %v1504_v12, 0.0  ;;  %v1537_v24 = vmax.f32 %v1505_v11, 0.0  ;;  %v1538_v28 = vmax.f32 %v1506_v14, 0.0  ;;  %v1539_v29 = vmax.f32 %v1507_v16, 0.0 }
 0x222   : > { %1564 = vst.msk [vmem:[%s2145_s20] sm:$0xff] %vm1076_vm4, %v1532_v19  ;;  %1565 = vst.msk [vmem:[%s2145_s20 + $0x8] sm:$0xff] %vm1076_vm4, %v1533_v21  ;;  %v1508_v54 = vmul.f32 %v2771_v0, %v1472_v38  ;;  %v1509_v30 = vmul.f32 %v2771_v0, %v1473_v41  ;;  %v1510_v9 = vmul.f32 %v2771_v0, %v1474_v43 }
 0x223   : > { %1566 = vst.msk [vmem:[%s2145_s20 + $0x10] sm:$0xff] %vm1076_vm4, %v1534_v23  ;;  %1567 = vst.msk [vmem:[%s2145_s20 + $0x18] sm:$0xff] %vm1076_vm4, %v1535_v25  ;;  %v1511_v36 = vmul.f32 %v2771_v0, %v1475_v32  ;;  %v1512_v39 = vmul.f32 %v2771_v0, %v1476_v44  ;;  %v1513_v38 = vmul.f32 %v2771_v0, %v1477_v46 }
 0x224   : > { %1568 = vst.msk [vmem:[%s2145_s20 + $0x20] sm:$0xff] %vm1076_vm4, %v1536_v26  ;;  %1569 = vst.msk [vmem:[%s2145_s20 + $0x28] sm:$0xff] %vm1076_vm4, %v1537_v24  ;;  %v1514_v41 = vmul.f32 %v2771_v0, %v1478_v47  ;;  %v1515_v43 = vmul.f32 %v2771_v0, %v1479_v31  ;;  %v1540_v32 = vmax.f32 %v1508_v54, 0.0  ;;  %v1541_v60 = vmax.f32 %v1509_v30, 0.0 }
 0x225   : > { %1570 = vst.msk [vmem:[%s2145_s20 + $0x30] sm:$0xff] %vm1076_vm4, %v1538_v28  ;;  %1571 = vst.msk [vmem:[%s2145_s20 + $0x38] sm:$0xff] %vm1076_vm4, %v1539_v29  ;;  %v1542_v52 = vmax.f32 %v1510_v9, 0.0  ;;  %v1543_v7 = vmax.f32 %v1511_v36, 0.0  ;;  %v1544_v8 = vmax.f32 %v1512_v39, 0.0  ;;  %v1545_v10 = vmax.f32 %v1513_v38, 0.0 }
 0x226   : > { %v1546_v12 = vmax.f32 %v1514_v41, 0.0  ;;  %v1547_v11 = vmax.f32 %v1515_v43, 0.0  ;;  %1572 = vst.msk [vmem:[%s2145_s20 + $0x40] sm:$0xff] %vm1076_vm4, %v1540_v32  ;;  %1573 = vst.msk [vmem:[%s2145_s20 + $0x48] sm:$0xff] %vm1076_vm4, %v1541_v60  ;;  %v1516_v44 = vmul.f32 %v2771_v0, %v1480_v48  ;;  %v1517_v46 = vmul.f32 %v2771_v0, %v1481_v53 }
 0x227   : > { %1574 = vst.msk [vmem:[%s2145_s20 + $0x50] sm:$0xff] %vm1076_vm4, %v1542_v52  ;;  %1575 = vst.msk [vmem:[%s2145_s20 + $0x58] sm:$0xff] %vm1076_vm4, %v1543_v7  ;;  %v1518_v47 = vmul.f32 %v2771_v0, %v1482_v55  ;;  %v1519_v31 = vmul.f32 %v2771_v0, %v1483_v57  ;;  %v1520_v27 = vmul.f32 %v2771_v0, %v1484_v58 }
 0x228   : > { %1576 = vst.msk [vmem:[%s2145_s20 + $0x60] sm:$0xff] %vm1076_vm4, %v1544_v8  ;;  %1577 = vst.msk [vmem:[%s2145_s20 + $0x68] sm:$0xff] %vm1076_vm4, %v1545_v10  ;;  %v1521_v18 = vmul.f32 %v2771_v0, %v1485_v61  ;;  %v1522_v33 = vmul.f32 %v2771_v0, %v1486_v62  ;;  %v1523_v34 = vmul.f32 %v2771_v0, %v1487_v15  ;;  %v1548_v48 = vmax.f32 %v1516_v44, 0.0 }
 0x229   : > { %1578 = vst.msk [vmem:[%s2145_s20 + $0x70] sm:$0xff] %vm1076_vm4, %v1546_v12  ;;  %1579 = vst.msk [vmem:[%s2145_s20 + $0x78] sm:$0xff] %vm1076_vm4, %v1547_v11  ;;  %v1549_v17 = vmax.f32 %v1517_v46, 0.0  ;;  %v1550_v53 = vmax.f32 %v1518_v47, 0.0  ;;  %v1551_v55 = vmax.f32 %v1519_v31, 0.0  ;;  %v1552_v20 = vmax.f32 %v1520_v27, 0.0 }
 0x22a   : > { %v1553_v57 = vmax.f32 %v1521_v18, 0.0  ;;  %v1554_v58 = vmax.f32 %v1522_v33, 0.0  ;;  %v1555_v61 = vmax.f32 %v1523_v34, 0.0  ;;  %1580 = vst.msk [vmem:[%s2145_s20 + $0x80] sm:$0xff] %vm1076_vm4, %v1548_v48  ;;  %v1524_v40 = vmul.f32 %v2771_v0, %v1488_v22 }
 0x22b   : > { %1581 = vst.msk [vmem:[%s2145_s20 + $0x88] sm:$0xff] %vm1076_vm4, %v1549_v17  ;;  %1582 = vst.msk [vmem:[%s2145_s20 + $0x90] sm:$0xff] %vm1076_vm4, %v1550_v53  ;;  %v1525_v45 = vmul.f32 %v2771_v0, %v1489_v1  ;;  %v1526_v62 = vmul.f32 %v2771_v0, %v1490_v3  ;;  %v1527_v15 = vmul.f32 %v2771_v0, %v1491_v42 }
 0x22c   : > { %1583 = vst.msk [vmem:[%s2145_s20 + $0x98] sm:$0xff] %vm1076_vm4, %v1551_v55  ;;  %1584 = vst.msk [vmem:[%s2145_s20 + $0xa0] sm:$0xff] %vm1076_vm4, %v1552_v20  ;;  %v1528_v2 = vmul.f32 %v2771_v0, %v1492_v5  ;;  %v1529_v13 = vmul.f32 %v2771_v0, %v1493_v6  ;;  %v1530_v49 = vmul.f32 %v2771_v0, %v1494_v56  ;;  %v1556_v51 = vmax.f32 %v1524_v40, 0.0 }
 0x22d   : > { %1585 = vst.msk [vmem:[%s2145_s20 + $0xa8] sm:$0xff] %vm1076_vm4, %v1553_v57  ;;  %1586 = vst.msk [vmem:[%s2145_s20 + $0xb0] sm:$0xff] %vm1076_vm4, %v1554_v58  ;;  %v1531_v50 = vmul.f32 %v2771_v0, %v1495_v4  ;;  %v1557_v22 = vmax.f32 %v1525_v45, 0.0  ;;  %v1558_v1 = vmax.f32 %v1526_v62, 0.0  ;;  %v1559_v59 = vmax.f32 %v1527_v15, 0.0 }
 0x22e   : > { %1587 = vst.msk [vmem:[%s2145_s20 + $0xb8] sm:$0xff] %vm1076_vm4, %v1555_v61  ;;  %v1560_v3 = vmax.f32 %v1528_v2, 0.0  ;;  %v1561_v42 = vmax.f32 %v1529_v13, 0.0  ;;  %v1562_v5 = vmax.f32 %v1530_v49, 0.0  ;;  %1588 = vst.msk [vmem:[%s2145_s20 + $0xc0] sm:$0xff] %vm1076_vm4, %v1556_v51 }
 0x22f   : > { %v1563_v6 = vmax.f32 %v1531_v50, 0.0  ;;  %1589 = vst.msk [vmem:[%s2145_s20 + $0xc8] sm:$0xff] %vm1076_vm4, %v1557_v22  ;;  %1590 = vst.msk [vmem:[%s2145_s20 + $0xd0] sm:$0xff] %vm1076_vm4, %v1558_v1 }
 0x230   : > { %1591 = vst.msk [vmem:[%s2145_s20 + $0xd8] sm:$0xff] %vm1076_vm4, %v1559_v59  ;;  %1592 = vst.msk [vmem:[%s2145_s20 + $0xe0] sm:$0xff] %vm1076_vm4, %v1560_v3 }
 0x231   : > { %1593 = vst.msk [vmem:[%s2145_s20 + $0xe8] sm:$0xff] %vm1076_vm4, %v1561_v42  ;;  %1594 = vst.msk [vmem:[%s2145_s20 + $0xf0] sm:$0xff] %vm1076_vm4, %v1562_v5 }
 0x232   : > { %1595 = vst.msk [vmem:[%s2145_s20 + $0xf8] sm:$0xff] %vm1076_vm4, %v1563_v6 }
 0x233 PF: > { %s12_s13 = sadd.s32 1, %s2084_s13   ;;  %s2949_s9 = smov %s2076_s11 }
 0x234   : > { %p9_p8 = scmp.ge.s32.totalorder %s12_s13, 6   ;;  %s2950_s10 = smov %s2080_s12 }
 0x235   : > { %s2951_s11 = smov %s2954_s14  ;;  %s2952_s12 = smov %s2958_s15 }
 0x236   :  { %11 = sbr.rel (!%p9_p8) target bundleno = 3 (0x3), region = 73 }

</bundles_post_ra>
